<compile_context>
chip_gen: v5e
topology: v5e:2x2
jax: 0.10.0
libtpu: 0.0.40
codegen_flags: <defaults>
</compile_context>

<pallas_src>
import functools

import numpy as np
import jax
import jax.numpy as jnp
from jax.experimental import pallas as pl
from jax.experimental.pallas import tpu as pltpu


def _vmem():
    return pl.BlockSpec(memory_space=pltpu.MemorySpace.VMEM)


# ----------------------------- fused Pallas kernel -----------------------------

def fused_dqn_kernel(patches_ref, sc_ref,
                     wconv_ref, bconv_ref,
                     wfcx_ref, fce_ref,
                     wfc2_ref, bfc2_ref,
                     w12_ref, whd_ref, oute_ref,
                     out_ref):
    dot = lambda a, b: jnp.dot(a, b, preferred_element_type=jnp.float32)

    # ---- both 2x2 convs as one block-diagonal im2col matmul + bias + ReLU (MXU) ----
    # patches: (B, P1*K1 + P2*K2), wconv: block-diag -> xf: (B, F) feature slab in VMEM.
    xf = jnp.maximum(dot(patches_ref[...], wconv_ref[...]) + bconv_ref[...], 0.0)

    # ---- scalar inputs: x_move / 4, x_pos / 18 (VPU) ----
    sc = sc_ref[...]                       # (B, 4) = [move_x, move_y, pos_x, pos_y]
    mvx = sc[:, 0:1] * 0.25
    mvy = sc[:, 1:2] * 0.25
    psx = sc[:, 2:3] * (1.0 / 18.0)
    psy = sc[:, 3:4] * (1.0 / 18.0)

    # ---- fc([x, move, pos]) -> ReLU: K=2 terms as rank-1 VPU updates ----
    h = dot(xf, wfcx_ref[...])
    h = h + mvx * fce_ref[0:1, :] + mvy * fce_ref[1:2, :]
    h = h + psx * fce_ref[2:3, :] + psy * fce_ref[3:4, :] + fce_ref[4:5, :]
    h = jnp.maximum(h, 0.0)

    # ---- fc2 -> ReLU ----
    h = jnp.maximum(dot(h, wfc2_ref[...]) + bfc2_ref[...], 0.0)

    # ---- single lane-dense 128-wide output slab:
    #      head at [:, :n_actions], head1 at [:, n_a:n_a+5], head2 at [:, n_a+5:n_a+10]
    #      (whd / w12 / oute are zero-padded so the three regions never overlap)
    o = dot(h, whd_ref[...]) + dot(xf, w12_ref[...])
    o = o + mvx * oute_ref[0:1, :] + mvy * oute_ref[1:2, :] + oute_ref[2:3, :]
    out_ref[...] = o


# ----------------------------- one-time parameter prep -----------------------------

def prepare_params(params, fovea_patch_num, periphery_patch_num, n_actions):
    """Hoists all weight slicing/transposition/permutation out of the hot path."""
    Wc1, bc1 = params["conv1"]
    Wc2, bc2 = params["conv2"]
    Wh1, bh1 = params["head1"]
    Wh2, bh2 = params["head2"]
    Wfc, bfc = params["fc"]
    Wfc2, bfc2 = params["fc2"]
    Whd, bhd = params["head"]

    P1 = (fovea_patch_num - 1) ** 2          # conv1 output positions
    P2 = (periphery_patch_num - 1) ** 2      # conv2 output positions
    K1 = Wc1.shape[1] * 4                    # im2col patch width, conv1
    K2 = Wc2.shape[1] * 4                    # im2col patch width, conv2
    F = (P1 + P2) * 16                       # conv feature count

    # Block-diagonal conv weight: one (B, P1*K1+P2*K2) @ (., F) matmul produces the whole
    # (B, F) feature slab in position-major/channel-minor layout.
    W1m = Wc1.reshape(16, K1).T              # (K1, 16), k = ic*4 + kh*2 + kw
    W2m = Wc2.reshape(16, K2).T
    wconv = jax.scipy.linalg.block_diag(*([W1m] * P1 + [W2m] * P2)).astype(jnp.float32)
    bconv = jnp.concatenate([jnp.tile(bc1, P1), jnp.tile(bc2, P2)]).reshape(1, F)

    # Permutation: our feature index (position-major) -> PyTorch's channel-major
    # torch.cat([conv1.view(B,-1), conv2.view(B,-1)]) column index.
    perm = np.empty(F, dtype=np.int32)
    for p in range(P1):
        for c in range(16):
            perm[p * 16 + c] = c * P1 + p
    for q in range(P2):
        for c in range(16):
            perm[(P1 + q) * 16 + c] = P1 * 16 + c * P2 + q

    # fc weights, permuted + pre-transposed; move/pos columns + bias packed as 5 rows.
    wfcx = Wfc[:, perm].T                                            # (F, 512)
    fce = jnp.stack([Wfc[:, F], Wfc[:, F + 1],
                     Wfc[:, F + 2], Wfc[:, F + 3], bfc], axis=0)     # (5, 512)

    OUT = 128
    off_h1 = n_actions
    off_h2 = n_actions + 5
    assert off_h2 + 5 <= OUT

    # head1/head2 feature weights packed into one zero-padded (F, 128) matrix.
    w12 = jnp.zeros((F, OUT), jnp.float32)
    w12 = w12.at[:, off_h1:off_h1 + 5].set(Wh1[:, perm].T)
    w12 = w12.at[:, off_h2:off_h2 + 5].set(Wh2[:, perm].T)

    # final head weight, zero-padded to 128 lanes.
    whd = jnp.zeros((128, OUT), jnp.float32).at[:, :n_actions].set(Whd.T)

    # move rank-1 rows + all three biases packed into one (3, 128) array.
    oute = jnp.zeros((3, OUT), jnp.float32)
    oute = oute.at[0, off_h1:off_h1 + 5].set(Wh1[:, F])   # head1 uses move_x
    oute = oute.at[1, off_h2:off_h2 + 5].set(Wh2[:, F])   # head2 uses move_y
    oute = oute.at[2, :n_actions].set(bhd)
    oute = oute.at[2, off_h1:off_h1 + 5].set(bh1)
    oute = oute.at[2, off_h2:off_h2 + 5].set(bh2)

    return dict(wconv=wconv, bconv=bconv,
                wfcx=wfcx, fce=fce,
                wfc2=Wfc2.T, bfc2=bfc2.reshape(1, -1),
                w12=w12, whd=whd, oute=oute)


# ----------------------------- forward wrapper (hot path) -----------------------------

def _im2col_2x2(x):
    """(B, C, H, W) -> (B, (H-1)*(W-1)*C*4), position-major, k = ic*4 + kh*2 + kw."""
    B, C, H, W = x.shape
    Ho, Wo = H - 1, W - 1
    cols = jnp.stack([x[:, :, kh:kh + Ho, kw:kw + Wo]
                      for kh in range(2) for kw in range(2)], axis=2)   # (B, C, 4, Ho, Wo)
    cols = cols.transpose(0, 3, 4, 1, 2)                                # (B, Ho, Wo, C, 4)
    return cols.reshape(B, Ho * Wo * C * 4).astype(jnp.float32)


def dqn_play_forward(weights, x1, x2, x_move, x_pos, *, n_actions):
    B = x1.shape[0]
    patches = jnp.concatenate([_im2col_2x2(x1), _im2col_2x2(x2)], axis=1)
    sc = jnp.concatenate([x_move, x_pos], axis=1).astype(jnp.float32)   # (B, 4)

    out = pl.pallas_call(
        fused_dqn_kernel,
        out_shape=jax.ShapeDtypeStruct((B, 128), jnp.float32),
        in_specs=[_vmem()] * 11,
        out_specs=_vmem(),
    )(patches, sc,
      weights["wconv"], weights["bconv"],
      weights["wfcx"], weights["fce"],
      weights["wfc2"], weights["bfc2"],
      weights["w12"], weights["whd"], weights["oute"])

    off_h1 = n_actions
    off_h2 = n_actions + 5
    head1 = out[:, off_h1:off_h1 + 5]
    head2 = out[:, off_h2:off_h2 + 5]
    head = out[:, :n_actions]
    return head1, head2, head


# ----------------------------- deterministic init -----------------------------

def init_params(key, in_channels, fovea_patch_num, periphery_patch_num, n_actions=14):
    num_f = fovea_patch_num - 1
    num_p = periphery_patch_num - 1
    feat = (num_p * num_p + num_f * num_f) * 16

    def linear(k, out_dim, in_dim):
        kw, kb = jax.random.split(k)
        lim = 1.0 / jnp.sqrt(jnp.float32(in_dim))
        W = jax.random.uniform(kw, (out_dim, in_dim), jnp.float32, -lim, lim)
        b = jax.random.uniform(kb, (out_dim,), jnp.float32, -lim, lim)
        return W, b

    def conv(k, out_c, in_c):
        kw, kb = jax.random.split(k)
        lim = 1.0 / jnp.sqrt(jnp.float32(in_c * 4))
        W = jax.random.uniform(kw, (out_c, in_c, 2, 2), jnp.float32, -lim, lim)
        b = jax.random.uniform(kb, (out_c,), jnp.float32, -lim, lim)
        return W, b

    ks = jax.random.split(key, 7)
    return {
        "conv1": conv(ks[0], 16, in_channels[0]),
        "conv2": conv(ks[1], 16, in_channels[1]),
        "head1": linear(ks[2], 5, feat + 1),
        "head2": linear(ks[3], 5, feat + 1),
        "fc":    linear(ks[4], 512, feat + 4),
        "fc2":   linear(ks[5], 128, 512),
        "head":  linear(ks[6], n_actions, 128),
    }


# ----------------------------- main -----------------------------

if __name__ == "__main__":
    key = jax.random.PRNGKey(0)
    kp, k1, k2, km, kpos = jax.random.split(key, 5)

    in_channels = (4, 4)
    fovea_patch_num, periphery_patch_num = 3, 5   # x1: 3x3 fovea, x2: 5x5 periphery
    n_actions = 14
    B = 2

    params = init_params(kp, in_channels, fovea_patch_num, periphery_patch_num, n_actions)
    weights = prepare_params(params, fovea_patch_num, periphery_patch_num, n_actions)
    jax.block_until_ready(weights)   # one-time prep, off the hot path

    x1 = jax.random.uniform(k1, (B, in_channels[0], fovea_patch_num, fovea_patch_num),
                            jnp.float32)
    x2 = jax.random.uniform(k2, (B, in_channels[1], periphery_patch_num, periphery_patch_num),
                            jnp.float32)
    x_move = jax.random.randint(km, (B, 2), 0, 5).astype(jnp.float32)
    x_pos = jax.random.randint(kpos, (B, 2), 0, 19).astype(jnp.float32)

    fwd = jax.jit(functools.partial(dqn_play_forward, n_actions=n_actions))
    head1, head2, head = fwd(weights, x1, x2, x_move, x_pos)
    jax.block_until_ready((head1, head2, head))

    assert head1.shape == (B, 5)
    assert head2.shape == (B, 5)
    assert head.shape == (B, n_actions)
    print("KERNEL_OK")
</pallas_src>

<mosaic_0001>
module attributes {stable_mosaic.version = 11 : i64} {
  func.func @fused_dqn_kernel(%arg0: memref<2x320xf32, #tpu.memory_space<vmem>>, %arg1: memref<2x4xf32, #tpu.memory_space<vmem>>, %arg2: memref<320x320xf32, #tpu.memory_space<vmem>>, %arg3: memref<1x320xf32, #tpu.memory_space<vmem>>, %arg4: memref<320x512xf32, #tpu.memory_space<vmem>>, %arg5: memref<5x512xf32, #tpu.memory_space<vmem>>, %arg6: memref<512x128xf32, #tpu.memory_space<vmem>>, %arg7: memref<1x128xf32, #tpu.memory_space<vmem>>, %arg8: memref<320x128xf32, #tpu.memory_space<vmem>>, %arg9: memref<128x128xf32, #tpu.memory_space<vmem>>, %arg10: memref<3x128xf32, #tpu.memory_space<vmem>>, %arg11: memref<2x128xf32, #tpu.memory_space<vmem>>) attributes {dimension_semantics = [], scalar_prefetch = 0 : i64, scratch_operands = 0 : i64, tpu.core_type = #tpu.core_type<tc>} {
    %c0 = arith.constant 0 : index
    %c0_0 = arith.constant 0 : index
    %0 = vector.load %arg0[%c0, %c0_0] : memref<2x320xf32, #tpu.memory_space<vmem>>, vector<2x320xf32>
    %c0_1 = arith.constant 0 : index
    %c0_2 = arith.constant 0 : index
    %1 = vector.load %arg2[%c0_1, %c0_2] : memref<320x320xf32, #tpu.memory_space<vmem>>, vector<320x320xf32>
    %cst = arith.constant dense<0.000000e+00> : vector<2x320xf32>
    %2 = tpu.matmul %0, %1, %cst {dimension_numbers = #tpu.dot_dimension_numbers<[1], [0], [0], [1], [0, 0, 1, 1], [], []>} : vector<2x320xf32>, vector<320x320xf32>, vector<2x320xf32> -> vector<2x320xf32>
    %c0_3 = arith.constant 0 : index
    %c0_4 = arith.constant 0 : index
    %3 = vector.load %arg3[%c0_3, %c0_4] : memref<1x320xf32, #tpu.memory_space<vmem>>, vector<1x320xf32>
    %4 = vector.broadcast %3 : vector<1x320xf32> to vector<2x320xf32>
    %5 = arith.addf %2, %4 : vector<2x320xf32>
    %cst_5 = arith.constant 0.000000e+00 : f32
    %6 = vector.broadcast %cst_5 : f32 to vector<2x320xf32>
    %7 = arith.maximumf %5, %6 : vector<2x320xf32>
    %c0_6 = arith.constant 0 : index
    %c0_7 = arith.constant 0 : index
    %8 = vector.load %arg1[%c0_6, %c0_7] : memref<2x4xf32, #tpu.memory_space<vmem>>, vector<2x4xf32>
    %9 = vector.extract_strided_slice %8 {offsets = [0, 0], sizes = [2, 1], strides = [1, 1]} : vector<2x4xf32> to vector<2x1xf32>
    %cst_8 = arith.constant 2.500000e-01 : f32
    %10 = vector.broadcast %cst_8 : f32 to vector<2x1xf32>
    %11 = arith.mulf %9, %10 : vector<2x1xf32>
    %12 = vector.extract_strided_slice %8 {offsets = [0, 1], sizes = [2, 1], strides = [1, 1]} : vector<2x4xf32> to vector<2x1xf32>
    %cst_9 = arith.constant 2.500000e-01 : f32
    %13 = vector.broadcast %cst_9 : f32 to vector<2x1xf32>
    %14 = arith.mulf %12, %13 : vector<2x1xf32>
    %15 = vector.extract_strided_slice %8 {offsets = [0, 2], sizes = [2, 1], strides = [1, 1]} : vector<2x4xf32> to vector<2x1xf32>
    %cst_10 = arith.constant 0.055555556 : f32
    %16 = vector.broadcast %cst_10 : f32 to vector<2x1xf32>
    %17 = arith.mulf %15, %16 : vector<2x1xf32>
    %18 = vector.extract_strided_slice %8 {offsets = [0, 3], sizes = [2, 1], strides = [1, 1]} : vector<2x4xf32> to vector<2x1xf32>
    %cst_11 = arith.constant 0.055555556 : f32
    %19 = vector.broadcast %cst_11 : f32 to vector<2x1xf32>
    %20 = arith.mulf %18, %19 : vector<2x1xf32>
    %c0_12 = arith.constant 0 : index
    %c0_13 = arith.constant 0 : index
    %21 = vector.load %arg4[%c0_12, %c0_13] : memref<320x512xf32, #tpu.memory_space<vmem>>, vector<320x512xf32>
    %cst_14 = arith.constant dense<0.000000e+00> : vector<2x512xf32>
    %22 = tpu.matmul %7, %21, %cst_14 {dimension_numbers = #tpu.dot_dimension_numbers<[1], [0], [0], [1], [0, 0, 1, 1], [], []>} : vector<2x320xf32>, vector<320x512xf32>, vector<2x512xf32> -> vector<2x512xf32>
    %c0_15 = arith.constant 0 : index
    %c0_16 = arith.constant 0 : index
    %23 = vector.load %arg5[%c0_15, %c0_16] : memref<5x512xf32, #tpu.memory_space<vmem>>, vector<1x512xf32>
    %24 = vector.broadcast %11 : vector<2x1xf32> to vector<2x512xf32>
    %25 = vector.broadcast %23 : vector<1x512xf32> to vector<2x512xf32>
    %26 = arith.mulf %24, %25 : vector<2x512xf32>
    %27 = arith.addf %22, %26 : vector<2x512xf32>
    %c1 = arith.constant 1 : index
    %c0_17 = arith.constant 0 : index
    %28 = vector.load %arg5[%c1, %c0_17] : memref<5x512xf32, #tpu.memory_space<vmem>>, vector<1x512xf32>
    %29 = vector.broadcast %14 : vector<2x1xf32> to vector<2x512xf32>
    %30 = vector.broadcast %28 : vector<1x512xf32> to vector<2x512xf32>
    %31 = arith.mulf %29, %30 : vector<2x512xf32>
    %32 = arith.addf %27, %31 : vector<2x512xf32>
    %c2 = arith.constant 2 : index
    %c0_18 = arith.constant 0 : index
    %33 = vector.load %arg5[%c2, %c0_18] : memref<5x512xf32, #tpu.memory_space<vmem>>, vector<1x512xf32>
    %34 = vector.broadcast %17 : vector<2x1xf32> to vector<2x512xf32>
    %35 = vector.broadcast %33 : vector<1x512xf32> to vector<2x512xf32>
    %36 = arith.mulf %34, %35 : vector<2x512xf32>
    %37 = arith.addf %32, %36 : vector<2x512xf32>
    %c3 = arith.constant 3 : index
    %c0_19 = arith.constant 0 : index
    %38 = vector.load %arg5[%c3, %c0_19] : memref<5x512xf32, #tpu.memory_space<vmem>>, vector<1x512xf32>
    %39 = vector.broadcast %20 : vector<2x1xf32> to vector<2x512xf32>
    %40 = vector.broadcast %38 : vector<1x512xf32> to vector<2x512xf32>
    %41 = arith.mulf %39, %40 : vector<2x512xf32>
    %42 = arith.addf %37, %41 : vector<2x512xf32>
    %c4 = arith.constant 4 : index
    %c0_20 = arith.constant 0 : index
    %43 = vector.load %arg5[%c4, %c0_20] : memref<5x512xf32, #tpu.memory_space<vmem>>, vector<1x512xf32>
    %44 = vector.broadcast %43 : vector<1x512xf32> to vector<2x512xf32>
    %45 = arith.addf %42, %44 : vector<2x512xf32>
    %cst_21 = arith.constant 0.000000e+00 : f32
    %46 = vector.broadcast %cst_21 : f32 to vector<2x512xf32>
    %47 = arith.maximumf %45, %46 : vector<2x512xf32>
    %c0_22 = arith.constant 0 : index
    %c0_23 = arith.constant 0 : index
    %48 = vector.load %arg6[%c0_22, %c0_23] : memref<512x128xf32, #tpu.memory_space<vmem>>, vector<512x128xf32>
    %cst_24 = arith.constant dense<0.000000e+00> : vector<2x128xf32>
    %49 = tpu.matmul %47, %48, %cst_24 {dimension_numbers = #tpu.dot_dimension_numbers<[1], [0], [0], [1], [0, 0, 1, 1], [], []>} : vector<2x512xf32>, vector<512x128xf32>, vector<2x128xf32> -> vector<2x128xf32>
    %c0_25 = arith.constant 0 : index
    %c0_26 = arith.constant 0 : index
    %50 = vector.load %arg7[%c0_25, %c0_26] : memref<1x128xf32, #tpu.memory_space<vmem>>, vector<1x128xf32>
    %51 = vector.broadcast %50 : vector<1x128xf32> to vector<2x128xf32>
    %52 = arith.addf %49, %51 : vector<2x128xf32>
    %cst_27 = arith.constant 0.000000e+00 : f32
    %53 = vector.broadcast %cst_27 : f32 to vector<2x128xf32>
    %54 = arith.maximumf %52, %53 : vector<2x128xf32>
    %c0_28 = arith.constant 0 : index
    %c0_29 = arith.constant 0 : index
    %55 = vector.load %arg9[%c0_28, %c0_29] : memref<128x128xf32, #tpu.memory_space<vmem>>, vector<128x128xf32>
    %cst_30 = arith.constant dense<0.000000e+00> : vector<2x128xf32>
    %56 = tpu.matmul %54, %55, %cst_30 {dimension_numbers = #tpu.dot_dimension_numbers<[1], [0], [0], [1], [0, 0, 1, 1], [], []>} : vector<2x128xf32>, vector<128x128xf32>, vector<2x128xf32> -> vector<2x128xf32>
    %c0_31 = arith.constant 0 : index
    %c0_32 = arith.constant 0 : index
    %57 = vector.load %arg8[%c0_31, %c0_32] : memref<320x128xf32, #tpu.memory_space<vmem>>, vector<320x128xf32>
    %cst_33 = arith.constant dense<0.000000e+00> : vector<2x128xf32>
    %58 = tpu.matmul %7, %57, %cst_33 {dimension_numbers = #tpu.dot_dimension_numbers<[1], [0], [0], [1], [0, 0, 1, 1], [], []>} : vector<2x320xf32>, vector<320x128xf32>, vector<2x128xf32> -> vector<2x128xf32>
    %59 = arith.addf %56, %58 : vector<2x128xf32>
    %c0_34 = arith.constant 0 : index
    %c0_35 = arith.constant 0 : index
    %60 = vector.load %arg10[%c0_34, %c0_35] : memref<3x128xf32, #tpu.memory_space<vmem>>, vector<1x128xf32>
    %61 = vector.broadcast %11 : vector<2x1xf32> to vector<2x128xf32>
    %62 = vector.broadcast %60 : vector<1x128xf32> to vector<2x128xf32>
    %63 = arith.mulf %61, %62 : vector<2x128xf32>
    %64 = arith.addf %59, %63 : vector<2x128xf32>
    %c1_36 = arith.constant 1 : index
    %c0_37 = arith.constant 0 : index
    %65 = vector.load %arg10[%c1_36, %c0_37] : memref<3x128xf32, #tpu.memory_space<vmem>>, vector<1x128xf32>
    %66 = vector.broadcast %14 : vector<2x1xf32> to vector<2x128xf32>
    %67 = vector.broadcast %65 : vector<1x128xf32> to vector<2x128xf32>
    %68 = arith.mulf %66, %67 : vector<2x128xf32>
    %69 = arith.addf %64, %68 : vector<2x128xf32>
    %c2_38 = arith.constant 2 : index
    %c0_39 = arith.constant 0 : index
    %70 = vector.load %arg10[%c2_38, %c0_39] : memref<3x128xf32, #tpu.memory_space<vmem>>, vector<1x128xf32>
    %71 = vector.broadcast %70 : vector<1x128xf32> to vector<2x128xf32>
    %72 = arith.addf %69, %71 : vector<2x128xf32>
    %c0_40 = arith.constant 0 : index
    %c0_41 = arith.constant 0 : index
    %73 = vector.load %arg11[%c0_40, %c0_41] : memref<2x128xf32, #tpu.memory_space<vmem>>, vector<2x128xf32>
    tpu.vector_store %arg11[%c0_40, %c0_41], %72 {strides = array<i32>} : memref<2x128xf32, #tpu.memory_space<vmem>>, vector<2x128xf32>,
    return
  }
}

</mosaic_0001>

<bundles_post_ra>
// kernel: dqn_play_forward.1
= control target key start
LH: loop header
LB: loop body
LE: loop exit
PB: predicated region body
PF: predicated region fallthrough
CT: control target
= control target key end

     0   :  { %16 = vsyncpa [#allocation3], 0  ;;  %s2040_s0 = inlined_call_operand.vmem [shape: f32[2,320], index: 0, kind: input, shape index: {}]   ;;  %s2041_s1 = inlined_call_operand.vmem [shape: f32[2,4], index: 1, kind: input, shape index: {}]   ;;  %s2042_s2 = inlined_call_operand.vmem [shape: f32[320,320], index: 2, kind: input, shape index: {}]   ;;  %s2043_s3 = inlined_call_operand.vmem [shape: f32[1,320], index: 3, kind: input, shape index: {}]   ;;  %s2044_s4 = inlined_call_operand.hbm [shape: f32[320,512], index: 4, kind: input, shape index: {}]   ;;  %s2045_s5 = inlined_call_operand.vmem [shape: f32[5,512], index: 5, kind: input, shape index: {}]   ;;  %s2046_s6 = inlined_call_operand.hbm [shape: f32[512,128], index: 6, kind: input, shape index: {}]   ;;  %s2047_s7 = inlined_call_operand.vmem [shape: f32[1,128], index: 7, kind: input, shape index: {}]   ;;  %s2048_s8 = inlined_call_operand.vmem [shape: f32[320,128], index: 8, kind: input, shape index: {}]   ;;  %s2049_s9 = inlined_call_operand.vmem [shape: f32[128,128], index: 9, kind: input, shape index: {}]   ;;  %s2050_s10 = inlined_call_operand.vmem [shape: f32[3,128], index: 10, kind: input, shape index: {}]   ;;  %s2051_s11 = inlined_call_operand.vmem [shape: f32[2,128], index: 11, kind: output, shape index: {}]  }
   0x1   :  { %s30_s19 = sshll.u32 %s2044_s4, 4  ;;  %s31_s19 = int_to_ptr.hbm [resolvable:$true] %s30_s19 }
   0x2   :  { %17 = vsyncpa [#allocation5], 0  ;;  %s1292_s20 = smov [#allocation2]   ;;  %s45_s24 = sshll.u32 %s2046_s6, 4  ;;  %s46_s24 = int_to_ptr.hbm [resolvable:$true] %s45_s24 }
   0x3   :  { %s32_s21 = sshll.u32 %s1292_s20, 4  ;;  %s1293_s25 = smov 512   ;;  %s33_s21 = int_to_ptr.vmem [resolvable:$true] %s32_s21 }
   0x4   :  { %s1294_s26 = smov 32   ;;  %s1295_s27 = smov [#allocation4]  }
   0x5   :  { %38 = dma.hbm_to_vmem [thread:$0]  %s31_s19, 20480, %s33_s21, [#allocation3], %s1293_s25, %s1293_s25, %s1294_s26  }
   0x6   :  { %s47_s28 = sshll.u32 %s1295_s27, 4  ;;  %s1296_s29 = smov 128   ;;  %s48_s28 = int_to_ptr.vmem [resolvable:$true] %s47_s28 }
   0x7   :  { %s1297_s30 = smov 8  }
   0x8   :  { %53 = dma.hbm_to_vmem [thread:$0]  %s46_s24, 8192, %s48_s28, [#allocation5], %s1296_s29, %s1296_s29, %s1297_s30  }
   0x9   :  { %1288 = dma.done.wait [#allocation3], 20480  }
   0xa   :  { %1289 = vsyncadd [#allocation3], 4294946816 }
   0xb   :  { %1290 = dma.done.wait [#allocation5], 8192  }
   0xc   :  { %1291 = vsyncadd [#allocation5], 4294959104  ;;  %v188_v0 = vld [vmem:[%s2042_s2 + $0x3a8] sm:$0xff]  ;;  %v117_v1 = vld [vmem:[%s2042_s2 + $0x170] sm:$0xff]  ;;  %vm206_vm0 = vcmask 523264  }
   0xd   :  { %v185_v2 = vld [vmem:[%s2042_s2 + $0x390] sm:$0xff]  ;;  %257 = vmatpush.msra.mxu2 %v188_v0  ;;  %269 = vmatpush.msra.mxu3 %v117_v1  ;;  %v114_v3 = vld [vmem:[%s2042_s2 + $0x158] sm:$0xff]  ;;  %v164_v4 = vld [vmem:[%s2042_s2 + $0x2e8] sm:$0xff] }
   0xe   :  { %229 = vmatpush.msra.mxu1 %v164_v4  ;;  %v182_v5 = vld [vmem:[%s2042_s2 + $0x378] sm:$0xff]  ;;  %v111_v6 = vld [vmem:[%s2042_s2 + $0x140] sm:$0xff]  ;;  %v161_v7 = vld [vmem:[%s2042_s2 + $0x2d0] sm:$0xff] }
   0xf   :  { %258 = vmatpush.msra.mxu2 %v185_v2  ;;  %270 = vmatpush.msra.mxu3 %v114_v3  ;;  %v116_v8 = vld [vmem:[%s2042_s2 + $0x168] sm:$0xff]  ;;  %v158_v9 = vld [vmem:[%s2042_s2 + $0x2b8] sm:$0xff]  ;;  %v179_v10 = vld [vmem:[%s2042_s2 + $0x360] sm:$0xff] }
  0x10   :  { %230 = vmatpush.msra.mxu1 %v161_v7  ;;  %v108_v11 = vld [vmem:[%s2042_s2 + $0x128] sm:$0xff]  ;;  %209 = vmatpush.msra.mxu0 %v116_v8  ;;  %v113_v12 = vld [vmem:[%s2042_s2 + $0x150] sm:$0xff]  ;;  %v155_v13 = vld [vmem:[%s2042_s2 + $0x2a0] sm:$0xff] }
  0x11   :  { %259 = vmatpush.msra.mxu2 %v182_v5  ;;  %271 = vmatpush.msra.mxu3 %v111_v6  ;;  %v176_v14 = vld [vmem:[%s2042_s2 + $0x348] sm:$0xff]  ;;  %v105_v15 = vld [vmem:[%s2042_s2 + $0x110] sm:$0xff]  ;;  %v110_v16 = vld [vmem:[%s2042_s2 + $0x138] sm:$0xff] }
  0x12   :  { %231 = vmatpush.msra.mxu1 %v158_v9  ;;  %210 = vmatpush.msra.mxu0 %v113_v12  ;;  %v152_v17 = vld [vmem:[%s2042_s2 + $0x288] sm:$0xff]  ;;  %v107_v18 = vld [vmem:[%s2042_s2 + $0x120] sm:$0xff]  ;;  %v173_v19 = vld [vmem:[%s2042_s2 + $0x330] sm:$0xff] }
  0x13   :  { %260 = vmatpush.msra.mxu2 %v179_v10  ;;  %272 = vmatpush.msra.mxu3 %v108_v11  ;;  %v102_v20 = vld [vmem:[%s2042_s2 + $0xf8] sm:$0xff]  ;;  %v149_v21 = vld [vmem:[%s2042_s2 + $0x270] sm:$0xff]  ;;  %v104_v22 = vld [vmem:[%s2042_s2 + $0x108] sm:$0xff] }
  0x14   :  { %232 = vmatpush.msra.mxu1 %v155_v13  ;;  %211 = vmatpush.msra.mxu0 %v110_v16  ;;  %v170_v23 = vld [vmem:[%s2042_s2 + $0x318] sm:$0xff]  ;;  %v99_v24 = vld [vmem:[%s2042_s2 + $0xe0] sm:$0xff]  ;;  %v101_v26 = vld [vmem:[%s2042_s2 + $0xf0] sm:$0xff] }
  0x15   :  { %261 = vmatpush.msra.mxu2 %v176_v14  ;;  %273 = vmatpush.msra.mxu3 %v105_v15  ;;  %v146_v25 = vld [vmem:[%s2042_s2 + $0x258] sm:$0xff]  ;;  %v167_v27 = vld [vmem:[%s2042_s2 + $0x300] sm:$0xff]  ;;  %v96_v28 = vld [vmem:[%s2042_s2 + $0xc8] sm:$0xff] }
  0x16   :  { %233 = vmatpush.msra.mxu1 %v152_v17  ;;  %212 = vmatpush.msra.mxu0 %v107_v18  ;;  %v165_v29 = vld [vmem:[%s2042_s2 + $0x2f0] sm:$0xff]  ;;  %v143_v30 = vld [vmem:[%s2042_s2 + $0x240] sm:$0xff]  ;;  %v98_v32 = vld [vmem:[%s2042_s2 + $0xd8] sm:$0xff] }
  0x17   :  { %262 = vmatpush.msra.mxu2 %v173_v19  ;;  %274 = vmatpush.msra.mxu3 %v102_v20  ;;  %v93_v31 = vld [vmem:[%s2042_s2 + $0xb0] sm:$0xff]  ;;  %v162_v33 = vld [vmem:[%s2042_s2 + $0x2d8] sm:$0xff]  ;;  %v140_v34 = vld [vmem:[%s2042_s2 + $0x228] sm:$0xff] }
  0x18   :  { %234 = vmatpush.msra.mxu1 %v149_v21  ;;  %213 = vmatpush.msra.mxu0 %v104_v22  ;;  %v90_v35 = vld [vmem:[%s2042_s2 + $0x98] sm:$0xff]  ;;  %v95_v36 = vld [vmem:[%s2042_s2 + $0xc0] sm:$0xff]  ;;  %v137_v38 = vld [vmem:[%s2042_s2 + $0x210] sm:$0xff] }
  0x19   :  { %263 = vmatpush.msra.mxu2 %v170_v23  ;;  %275 = vmatpush.msra.mxu3 %v99_v24  ;;  %v159_v37 = vld [vmem:[%s2042_s2 + $0x2c0] sm:$0xff]  ;;  %v92_v40 = vld [vmem:[%s2042_s2 + $0xa8] sm:$0xff]  ;;  %v134_v42 = vld [vmem:[%s2042_s2 + $0x1f8] sm:$0xff] }
  0x1a   :  { %235 = vmatpush.msra.mxu1 %v146_v25  ;;  %214 = vmatpush.msra.mxu0 %v101_v26  ;;  %v87_v39 = vld [vmem:[%s2042_s2 + $0x80] sm:$0xff]  ;;  %v156_v41 = vld [vmem:[%s2042_s2 + $0x2a8] sm:$0xff]  ;;  %v89_v44 = vld [vmem:[%s2042_s2 + $0x90] sm:$0xff] }
  0x1b   :  { %264 = vmatpush.msra.mxu2 %v167_v27  ;;  %276 = vmatpush.msra.mxu3 %v96_v28  ;;  %v84_v43 = vld [vmem:[%s2042_s2 + $0x68] sm:$0xff]  ;;  %v153_v45 = vld [vmem:[%s2042_s2 + $0x290] sm:$0xff]  ;;  %v131_v46 = vld [vmem:[%s2042_s2 + $0x1e0] sm:$0xff] }
  0x1c   :  { %236 = vmatpush.msra.mxu1 %v143_v30  ;;  %215 = vmatpush.msra.mxu0 %v98_v32  ;;  %v81_v47 = vld [vmem:[%s2042_s2 + $0x50] sm:$0xff]  ;;  %v86_v48 = vld [vmem:[%s2042_s2 + $0x78] sm:$0xff]  ;;  %v128_v50 = vld [vmem:[%s2042_s2 + $0x1c8] sm:$0xff] }
  0x1d   :  { %289 = vmatpush.msrb.mxu2 %v165_v29  ;;  %277 = vmatpush.msra.mxu3 %v93_v31  ;;  %v150_v49 = vld [vmem:[%s2042_s2 + $0x278] sm:$0xff]  ;;  %v83_v52 = vld [vmem:[%s2042_s2 + $0x60] sm:$0xff]  ;;  %v125_v55 = vld [vmem:[%s2042_s2 + $0x1b0] sm:$0xff] }
  0x1e   :  { %237 = vmatpush.msra.mxu1 %v140_v34  ;;  %216 = vmatpush.msra.mxu0 %v95_v36  ;;  %v78_v51 = vld [vmem:[%s2042_s2 + $0x38] sm:$0xff]  ;;  %v70_v53 = vld [vmem:[%s2040_s0] sm:$0x3f]  ;;  %v80_v57 = vld [vmem:[%s2042_s2 + $0x48] sm:$0xff] }
  0x1f   :  { %290 = vmatpush.msrb.mxu2 %v162_v33  ;;  %278 = vmatpush.msra.mxu3 %v90_v35  ;;  %v147_v54 = vld [vmem:[%s2042_s2 + $0x260] sm:$0xff]  ;;  %200 = vst [vmem:[#allocation1] ss:$4 sm:$0xff] %v70_v53  ;;  %v144_v58 = vld [vmem:[%s2042_s2 + $0x248] sm:$0xff]  ;;  %v122_v59 = vld [vmem:[%s2042_s2 + $0x198] sm:$0xff] }
  0x20   :  { %238 = vmatpush.msra.mxu1 %v137_v38  ;;  %217 = vmatpush.msra.mxu0 %v92_v40  ;;  %v75_v56 = vld [vmem:[%s2042_s2 + $0x20] sm:$0xff]  ;;  %v72_v60 = vld [vmem:[%s2042_s2 + $0x8] sm:$0xff]  ;;  %v77_v61 = vld [vmem:[%s2042_s2 + $0x30] sm:$0xff] }
  0x21   :  { %291 = vmatpush.msrb.mxu2 %v159_v37  ;;  %279 = vmatpush.msra.mxu3 %v87_v39  ;;  %v141_v62 = vld [vmem:[%s2042_s2 + $0x230] sm:$0xff]  ;;  %v166_v63 = vld [vmem:[%s2042_s2 + $0x2f8] sm:$0xff]  ;;  %v119_v0 = vld [vmem:[%s2042_s2 + $0x180] sm:$0xff] }
  0x22   :  { %239 = vmatpush.msra.mxu1 %v134_v42  ;;  %218 = vmatpush.msra.mxu0 %v89_v44  ;;  %v74_v1 = vld [vmem:[%s2042_s2 + $0x18] sm:$0xff]  ;;  %v163_v3 = vld [vmem:[%s2042_s2 + $0x2e0] sm:$0xff]  ;;  %v160_v7 = vld [vmem:[%s2042_s2 + $0x2c8] sm:$0xff] }
  0x23   :  { %292 = vmatpush.msrb.mxu2 %v156_v41  ;;  %280 = vmatpush.msra.mxu3 %v84_v43  ;;  %v138_v2 = vld [vmem:[%s2042_s2 + $0x218] sm:$0xff]  ;;  %v71_v5 = vld [vmem:[%s2042_s2] sm:$0xff]  ;;  %v132_v10 = vld [vmem:[%s2042_s2 + $0x1e8] sm:$0xff] }
  0x24   :  { %240 = vmatpush.msra.mxu1 %v131_v46  ;;  %219 = vmatpush.msra.mxu0 %v86_v48  ;;  %v118_v4 = vld [vmem:[%s2042_s2 + $0x178] sm:$0xff]  ;;  %v135_v6 = vld [vmem:[%s2042_s2 + $0x200] sm:$0xff]  ;;  %v157_v11 = vld [vmem:[%s2042_s2 + $0x2b0] sm:$0xff] }
  0x25   :  { %293 = vmatpush.msrb.mxu2 %v153_v45  ;;  %281 = vmatpush.msra.mxu3 %v81_v47  ;;  %v115_v8 = vld [vmem:[%s2042_s2 + $0x160] sm:$0xff]  ;;  %v189_v12 = vld [vmem:[%s2042_s2 + $0x3b0] sm:$0xff]  ;;  %v112_v13 = vld [vmem:[%s2042_s2 + $0x148] sm:$0xff] }
  0x26   :  { %241 = vmatpush.msra.mxu1 %v128_v50  ;;  %220 = vmatpush.msra.mxu0 %v83_v52  ;;  %v1587_v9 = vld.sshfl [vmem:[#allocation1 + $0x10] sm:$0xff pattern:$0x73625140]  ;;  %v154_v15 = vld [vmem:[%s2042_s2 + $0x298] sm:$0xff]  ;;  %v151_v19 = vld [vmem:[%s2042_s2 + $0x280] sm:$0xff] }
  0x27   :  { %294 = vmatpush.msrb.mxu2 %v150_v49  ;;  %282 = vmatpush.msra.mxu3 %v78_v51  ;;  %v129_v14 = vld [vmem:[%s2042_s2 + $0x1d0] sm:$0xff]  ;;  %v186_v16 = vld [vmem:[%s2042_s2 + $0x398] sm:$0xff]  ;;  %v1621_v20 = vld.sshfl [vmem:[#allocation1] sm:$0xff pattern:$0x73625140] }
  0x28   :  { %242 = vmatpush.msra.mxu1 %v125_v55  ;;  %221 = vmatpush.msra.mxu0 %v80_v57  ;;  %v109_v17 = vld [vmem:[%s2042_s2 + $0x130] sm:$0xff]  ;;  %v126_v18 = vld [vmem:[%s2042_s2 + $0x1b8] sm:$0xff]  ;;  %v123_v22 = vld [vmem:[%s2042_s2 + $0x1a0] sm:$0xff] }
  0x29   :  { %295 = vmatpush.msrb.mxu2 %v147_v54  ;;  %283 = vmatpush.msra.mxu3 %v75_v56  ;;  %v106_v21 = vld [vmem:[%s2042_s2 + $0x118] sm:$0xff]  ;;  %v183_v23 = vld [vmem:[%s2042_s2 + $0x380] sm:$0xff]  ;;  %v1632_v24 = vld.sshfl [vmem:[#allocation1 + $0x8] sm:$0xff pattern:$0x73625140] }
  0x2a   :  { %243 = vmatpush.msra.mxu1 %v122_v59  ;;  %222 = vmatpush.msra.mxu0 %v77_v61  ;;  %v148_v25 = vld [vmem:[%s2042_s2 + $0x268] sm:$0xff]  ;;  %v103_v28 = vld [vmem:[%s2042_s2 + $0x100] sm:$0xff]  ;;  %v145_v29 = vld [vmem:[%s2042_s2 + $0x250] sm:$0xff] }
  0x2b   :  { %296 = vmatpush.msrb.mxu2 %v144_v58  ;;  %284 = vmatpush.msra.mxu3 %v72_v60  ;;  %v120_v26 = vld [vmem:[%s2042_s2 + $0x188] sm:$0xff]  ;;  %v177_v30 = vld [vmem:[%s2042_s2 + $0x350] sm:$0xff]  ;;  %v142_v32 = vld [vmem:[%s2042_s2 + $0x238] sm:$0xff] }
  0x2c   :  { %244 = vmatpush.msra.mxu1 %v119_v0  ;;  %223 = vmatpush.msra.mxu0 %v74_v1  ;;  %v180_v27 = vld [vmem:[%s2042_s2 + $0x368] sm:$0xff]  ;;  %v174_v33 = vld [vmem:[%s2042_s2 + $0x338] sm:$0xff]  ;;  %v97_v34 = vld [vmem:[%s2042_s2 + $0xd0] sm:$0xff] }
  0x2d   :  { %297 = vmatpush.msrb.mxu2 %v141_v62  ;;  %349 = vmatpush.msrb.mxu3 %v166_v63  ;;  %v100_v31 = vld [vmem:[%s2042_s2 + $0xe8] sm:$0xff]  ;;  %v139_v36 = vld [vmem:[%s2042_s2 + $0x220] sm:$0xff]  ;;  %v94_v38 = vld [vmem:[%s2042_s2 + $0xb8] sm:$0xff] }
  0x2e   :  { %329 = vmatpush.msrb.mxu1 %v118_v4  ;;  %224 = vmatpush.msra.mxu0 %v71_v5  ;;  %v455_v35 = vld [vmem:[#allocation2 + $0x1e0] sm:$0xff]  ;;  %v171_v37 = vld [vmem:[%s2042_s2 + $0x320] sm:$0xff]  ;;  %v133_v44 = vld [vmem:[%s2042_s2 + $0x1f0] sm:$0xff] }
  0x2f   :  { %298 = vmatpush.msrb.mxu2 %v138_v2  ;;  %350 = vmatpush.msrb.mxu3 %v163_v3  ;;  %v451_v39 = vld [vmem:[#allocation2 + $0x1c0] sm:$0xff]  ;;  %v91_v42 = vld [vmem:[%s2042_s2 + $0xa0] sm:$0xff]  ;;  %v190_v46 = vld [vmem:[%s2042_s2 + $0x3b8] sm:$0xff] }
  0x30   :  { %330 = vmatpush.msrb.mxu1 %v115_v8  ;;  %1209 = vmatmul.msk.f32.vlgmr.msra.gmra.mxu2 %vm206_vm0, %v1587_v9  ;;  %v136_v40 = vld [vmem:[%s2042_s2 + $0x208] sm:$0xff]  ;;  %v130_v47 = vld [vmem:[%s2042_s2 + $0x1d8] sm:$0xff]  ;;  %v85_v49 = vld [vmem:[%s2042_s2 + $0x70] sm:$0xff] }
  0x31   :  { %299 = vmatpush.msrb.mxu2 %v135_v6  ;;  %351 = vmatpush.msrb.mxu3 %v160_v7  ;;  %v168_v41 = vld [vmem:[%s2042_s2 + $0x308] sm:$0xff]  ;;  %v187_v50 = vld [vmem:[%s2042_s2 + $0x3a0] sm:$0xff]  ;;  %v82_v53 = vld [vmem:[%s2042_s2 + $0x58] sm:$0xff] }
  0x32   :  { %317 = vmatpush.msrb.mxu0 %v189_v12  ;;  %331 = vmatpush.msrb.mxu1 %v112_v13  ;;  %v447_v43 = vld [vmem:[#allocation2 + $0x1a0] sm:$0xff]  ;;  %v127_v51 = vld [vmem:[%s2042_s2 + $0x1c0] sm:$0xff]  ;;  %v181_v58 = vld [vmem:[%s2042_s2 + $0x370] sm:$0xff] }
  0x33   :  { %300 = vmatpush.msrb.mxu2 %v132_v10  ;;  %352 = vmatpush.msrb.mxu3 %v157_v11  ;;  %v88_v45 = vld [vmem:[%s2042_s2 + $0x88] sm:$0xff]  ;;  %v79_v57 = vld [vmem:[%s2042_s2 + $0x40] sm:$0xff]  ;;  %v121_v59 = vld [vmem:[%s2042_s2 + $0x190] sm:$0xff] }
  0x34   :  { %318 = vmatpush.msrb.mxu0 %v186_v16  ;;  %332 = vmatpush.msrb.mxu1 %v109_v17  ;;  %v443_v48 = vld [vmem:[#allocation2 + $0x180] sm:$0xff]  ;;  %v178_v62 = vld [vmem:[%s2042_s2 + $0x358] sm:$0xff]  ;;  %v456_v63 = vld [vmem:[#allocation2 + $0x1e8] sm:$0xff] }
  0x35   :  { %301 = vmatpush.msrb.mxu2 %v129_v14  ;;  %353 = vmatpush.msrb.mxu3 %v154_v15  ;;  %v439_v52 = vld [vmem:[#allocation2 + $0x160] sm:$0xff]  ;;  %v73_v0 = vld [vmem:[%s2042_s2 + $0x10] sm:$0xff]  ;;  %v175_v2 = vld [vmem:[%s2042_s2 + $0x340] sm:$0xff] }
  0x36   :  { %225 = vmatmul.f32.vlgmr.msra.gmra.mxu0 %v1621_v20  ;;  %333 = vmatpush.msrb.mxu1 %v106_v21  ;;  %v184_v54 = vld [vmem:[%s2042_s2 + $0x388] sm:$0xff]  ;;  %v452_v3 = vld [vmem:[#allocation2 + $0x1c8] sm:$0xff] }
  0x37   :  { %302 = vmatpush.msrb.mxu2 %v126_v18  ;;  %354 = vmatpush.msrb.mxu3 %v151_v19  ;;  %v124_v55 = vld [vmem:[%s2042_s2 + $0x1a8] sm:$0xff]  ;;  %v448_v6 = vld [vmem:[#allocation2 + $0x1a8] sm:$0xff] }
  0x38   :  { %319 = vmatpush.msrb.mxu0 %v183_v23  ;;  %245 = vmatmul.f32.vlgmr.msra.gmra.mxu1 %v1632_v24  ;;  %v435_v56 = vld [vmem:[#allocation2 + $0x140] sm:$0xff]  ;;  %v169_v8 = vld [vmem:[%s2042_s2 + $0x310] sm:$0xff] }
  0x39   :  { %303 = vmatpush.msrb.mxu2 %v123_v22  ;;  %355 = vmatpush.msrb.mxu3 %v148_v25  ;;  %v431_v60 = vld [vmem:[#allocation2 + $0x120] sm:$0xff]  ;;  %v444_v10 = vld [vmem:[#allocation2 + $0x188] sm:$0xff] }
  0x3a   :  { %285 = vmatmul.f32.vlgmr.msra.gmra.mxu3 %v1621_v20  ;;  %320 = vmatpush.msrb.mxu0 %v180_v27  ;;  %v76_v61 = vld [vmem:[%s2042_s2 + $0x28] sm:$0xff]  ;;  %v440_v13 = vld [vmem:[#allocation2 + $0x168] sm:$0xff] }
  0x3b   :  { %304 = vmatpush.msrb.mxu2 %v120_v26  ;;  %334 = vmatpush.msrb.mxu1 %v103_v28  ;;  %v427_v1 = vld [vmem:[#allocation2 + $0x100] sm:$0xff]  ;;  %v436_v17 = vld [vmem:[#allocation2 + $0x148] sm:$0xff] }
  0x3c   :  { %356 = vmatpush.msrb.mxu3 %v145_v29  ;;  %305 = vmatmul.f32.vlgmr.msrb.gmra.mxu2 %v1632_v24  ;;  %v423_v4 = vld [vmem:[#allocation2 + $0xe0] sm:$0xff]  ;;  %v432_v21 = vld [vmem:[#allocation2 + $0x128] sm:$0xff] }
  0x3d   :  { %321 = vmatpush.msrb.mxu0 %v177_v30  ;;  %335 = vmatpush.msrb.mxu1 %v100_v31  ;;  %v172_v5 = vld [vmem:[%s2042_s2 + $0x328] sm:$0xff]  ;;  %v424_v28 = vld [vmem:[#allocation2 + $0xe8] sm:$0xff] }
  0x3e   :  { %357 = vmatpush.msrb.mxu3 %v142_v32  ;;  %577 = vmatpush.msra.mxu2 %v455_v35  ;;  %v419_v7 = vld [vmem:[#allocation2 + $0xc0] sm:$0xff]  ;;  %v420_v32 = vld [vmem:[#allocation2 + $0xc8] sm:$0xff] }
  0x3f   :  { %322 = vmatpush.msrb.mxu0 %v174_v33  ;;  %336 = vmatpush.msrb.mxu1 %v97_v34  ;;  %v519_v11 = vld [vmem:[#allocation2 + $0x3e0] sm:$0xff]  ;;  %v552_v33 = vld [vmem:[#allocation2 + $0x4e8] sm:$0xff] }
  0x40   :  { %358 = vmatpush.msrb.mxu3 %v139_v36  ;;  %578 = vmatpush.msra.mxu2 %v451_v39  ;;  %v415_v12 = vld [vmem:[#allocation2 + $0xa0] sm:$0xff]  ;;  %v416_v36 = vld [vmem:[#allocation2 + $0xa8] sm:$0xff] }
  0x41   :  { %323 = vmatpush.msrb.mxu0 %v171_v37  ;;  %337 = vmatpush.msrb.mxu1 %v94_v38  ;;  %v551_v14 = vld [vmem:[#allocation2 + $0x4e0] sm:$0xff]  ;;  %v548_v37 = vld [vmem:[#allocation2 + $0x4c8] sm:$0xff] }
  0x42   :  { %359 = vmatpush.msrb.mxu3 %v136_v40  ;;  %579 = vmatpush.msra.mxu2 %v447_v43  ;;  %v515_v15 = vld [vmem:[#allocation2 + $0x3c0] sm:$0xff]  ;;  %v412_v40 = vld [vmem:[#allocation2 + $0x88] sm:$0xff] }
  0x43   :  { %324 = vmatpush.msrb.mxu0 %v168_v41  ;;  %338 = vmatpush.msrb.mxu1 %v91_v42  ;;  %v411_v16 = vld [vmem:[#allocation2 + $0x80] sm:$0xff]  ;;  %v544_v41 = vld [vmem:[#allocation2 + $0x4a8] sm:$0xff] }
  0x44   :  { %360 = vmatpush.msrb.mxu3 %v133_v44  ;;  %1210 = vmatmul.msk.f32.vlgmr.msrb.gmra.mxu0 %vm206_vm0, %v1587_v9  ;;  %v547_v18 = vld [vmem:[#allocation2 + $0x4c0] sm:$0xff]  ;;  %v408_v43 = vld [vmem:[#allocation2 + $0x68] sm:$0xff] }
  0x45   :  { %339 = vmatpush.msrb.mxu1 %v88_v45  ;;  %377 = vmatpush.msra.mxu0 %v190_v46  ;;  %v511_v19 = vld [vmem:[#allocation2 + $0x3a0] sm:$0xff]  ;;  %v404_v45 = vld [vmem:[#allocation2 + $0x48] sm:$0xff] }
  0x46   :  { %361 = vmatpush.msrb.mxu3 %v130_v47  ;;  %580 = vmatpush.msra.mxu2 %v443_v48  ;;  %v543_v22 = vld [vmem:[#allocation2 + $0x4a0] sm:$0xff]  ;;  %v400_v47 = vld [vmem:[#allocation2 + $0x28] sm:$0xff] }
  0x47   :  { %340 = vmatpush.msrb.mxu1 %v85_v49  ;;  %378 = vmatpush.msra.mxu0 %v187_v50  ;;  %v507_v23 = vld [vmem:[#allocation2 + $0x380] sm:$0xff]  ;;  %v396_v49 = vld [vmem:[#allocation2 + $0x8] sm:$0xff] }
  0x48   :  { %362 = vmatpush.msrb.mxu3 %v127_v51  ;;  %581 = vmatpush.msra.mxu2 %v439_v52  ;;  %v539_v25 = vld [vmem:[#allocation2 + $0x480] sm:$0xff]  ;;  %v553_v51 = vld [vmem:[#allocation2 + $0x4f0] sm:$0xff] }
  0x49   :  { %341 = vmatpush.msrb.mxu1 %v82_v53  ;;  %379 = vmatpush.msra.mxu0 %v184_v54  ;;  %v503_v26 = vld [vmem:[#allocation2 + $0x360] sm:$0xff]  ;;  %v549_v53 = vld [vmem:[#allocation2 + $0x4d0] sm:$0xff] }
  0x4a   :  { %363 = vmatpush.msrb.mxu3 %v124_v55  ;;  %582 = vmatpush.msra.mxu2 %v435_v56  ;;  %v399_v27 = vld [vmem:[#allocation2 + $0x20] sm:$0xff]  ;;  %v545_v55 = vld [vmem:[#allocation2 + $0x4b0] sm:$0xff] }
  0x4b   :  { %342 = vmatpush.msrb.mxu1 %v79_v57  ;;  %380 = vmatpush.msra.mxu0 %v181_v58  ;;  %v535_v29 = vld [vmem:[#allocation2 + $0x460] sm:$0xff]  ;;  %v457_v57 = vld [vmem:[#allocation2 + $0x1f0] sm:$0xff] }
  0x4c   :  { %364 = vmatpush.msrb.mxu3 %v121_v59  ;;  %583 = vmatpush.msra.mxu2 %v431_v60  ;;  %v499_v30 = vld [vmem:[#allocation2 + $0x340] sm:$0xff]  ;;  %v453_v58 = vld [vmem:[#allocation2 + $0x1d0] sm:$0xff] }
  0x4d   :  { %365 = vmatmul.f32.vlgmr.msrb.gmra.mxu3 %v1632_v24  ;;  %343 = vmatpush.msrb.mxu1 %v76_v61  ;;  %v403_v24 = vld [vmem:[#allocation2 + $0x40] sm:$0xff]  ;;  %v449_v59 = vld [vmem:[#allocation2 + $0x1b0] sm:$0xff] }
  0x4e   :  { %381 = vmatpush.msra.mxu0 %v178_v62  ;;  %637 = vmatpush.msra.mxu3 %v456_v63  ;;  %v395_v31 = vld [vmem:[#allocation2] sm:$0xff]  ;;  %v445_v60 = vld [vmem:[#allocation2 + $0x190] sm:$0xff] }
  0x4f   :  { %344 = vmatpush.msrb.mxu1 %v73_v0  ;;  %584 = vmatpush.msra.mxu2 %v427_v1  ;;  %v495_v34 = vld [vmem:[#allocation2 + $0x320] sm:$0xff]  ;;  %v441_v61 = vld [vmem:[#allocation2 + $0x170] sm:$0xff]  ;;  %v540_v1 = vld [vmem:[#allocation2 + $0x488] sm:$0xff] }
  0x50   :  { %382 = vmatpush.msra.mxu0 %v175_v2  ;;  %345 = vmatmul.f32.vlgmr.msrb.gmra.mxu1 %v1621_v20  ;;  %v407_v20 = vld [vmem:[#allocation2 + $0x60] sm:$0xff]  ;;  %v437_v62 = vld [vmem:[#allocation2 + $0x150] sm:$0xff] }
  0x51   :  { %638 = vmatpush.msra.mxu3 %v452_v3  ;;  %585 = vmatpush.msra.mxu2 %v423_v4  ;;  %v531_v35 = vld [vmem:[#allocation2 + $0x440] sm:$0xff]  ;;  %v433_v63 = vld [vmem:[#allocation2 + $0x130] sm:$0xff]  ;;  %v520_v4 = vld [vmem:[#allocation2 + $0x3e8] sm:$0xff] }
  0x52   :  { %383 = vmatpush.msra.mxu0 %v172_v5  ;;  %625 = vmatpush.msra.mxu1 %v551_v14  ;;  %v491_v38 = vld [vmem:[#allocation2 + $0x300] sm:$0xff]  ;;  %v429_v2 = vld [vmem:[#allocation2 + $0x110] sm:$0xff]  ;;  %v536_v5 = vld [vmem:[#allocation2 + $0x468] sm:$0xff] }
  0x53   :  { %639 = vmatpush.msra.mxu3 %v448_v6  ;;  %586 = vmatpush.msra.mxu2 %v419_v7  ;;  %v527_v39 = vld [vmem:[#allocation2 + $0x420] sm:$0xff]  ;;  %v541_v3 = vld [vmem:[#allocation2 + $0x490] sm:$0xff]  ;;  %v528_v14 = vld [vmem:[#allocation2 + $0x428] sm:$0xff] }
  0x54   :  { %384 = vmatpush.msra.mxu0 %v169_v8  ;;  %626 = vmatpush.msra.mxu1 %v547_v18  ;;  %v487_v42 = vld [vmem:[#allocation2 + $0x2e0] sm:$0xff]  ;;  %v425_v6 = vld [vmem:[#allocation2 + $0xf0] sm:$0xff]  ;;  %v516_v8 = vld [vmem:[#allocation2 + $0x3c8] sm:$0xff] }
  0x55   :  { %1211 = vmatmul.msk.f32.vlgmr.msra.gmra.mxu0 %vm206_vm0, %v1587_v9  ;;  %640 = vmatpush.msra.mxu3 %v444_v10  ;;  %v428_v9 = vld [vmem:[#allocation2 + $0x108] sm:$0xff]  ;;  %v483_v44 = vld [vmem:[#allocation2 + $0x2c0] sm:$0xff]  ;;  %v537_v7 = vld [vmem:[#allocation2 + $0x470] sm:$0xff] }
  0x56   :  { %597 = vmatpush.msrb.mxu0 %v519_v11  ;;  %587 = vmatpush.msra.mxu2 %v415_v12  ;;  %v479_v46 = vld [vmem:[#allocation2 + $0x2a0] sm:$0xff]  ;;  %v532_v10 = vld [vmem:[#allocation2 + $0x448] sm:$0xff]  ;;  %v421_v11 = vld [vmem:[#allocation2 + $0xd0] sm:$0xff] }
  0x57   :  { %641 = vmatpush.msra.mxu3 %v440_v13  ;;  %627 = vmatpush.msra.mxu1 %v543_v22  ;;  %v475_v48 = vld [vmem:[#allocation2 + $0x280] sm:$0xff]  ;;  %v533_v12 = vld [vmem:[#allocation2 + $0x450] sm:$0xff]  ;;  %v512_v13 = vld [vmem:[#allocation2 + $0x3a8] sm:$0xff] }
  0x58   :  { %598 = vmatpush.msrb.mxu0 %v515_v15  ;;  %588 = vmatpush.msra.mxu2 %v411_v16  ;;  %v471_v50 = vld [vmem:[#allocation2 + $0x260] sm:$0xff]  ;;  %v417_v15 = vld [vmem:[#allocation2 + $0xb0] sm:$0xff]  ;;  %v524_v18 = vld [vmem:[#allocation2 + $0x408] sm:$0xff] }
  0x59   :  { %642 = vmatpush.msra.mxu3 %v436_v17  ;;  %628 = vmatpush.msra.mxu1 %v539_v25  ;;  %v467_v52 = vld [vmem:[#allocation2 + $0x240] sm:$0xff]  ;;  %v529_v16 = vld [vmem:[#allocation2 + $0x430] sm:$0xff]  ;;  %v508_v17 = vld [vmem:[#allocation2 + $0x388] sm:$0xff] }
  0x5a   :  { %599 = vmatpush.msrb.mxu0 %v511_v19  ;;  %589 = vmatpush.msra.mxu2 %v407_v20  ;;  %v463_v54 = vld [vmem:[#allocation2 + $0x220] sm:$0xff]  ;;  %v413_v19 = vld [vmem:[#allocation2 + $0x90] sm:$0xff] }
  0x5b   :  { %643 = vmatpush.msra.mxu3 %v432_v21  ;;  %629 = vmatpush.msra.mxu1 %v535_v29  ;;  %v459_v56 = vld [vmem:[#allocation2 + $0x200] sm:$0xff]  ;;  %v525_v20 = vld [vmem:[#allocation2 + $0x410] sm:$0xff]  ;;  %v504_v21 = vld [vmem:[#allocation2 + $0x368] sm:$0xff] }
  0x5c   :  { %600 = vmatpush.msrb.mxu0 %v507_v23  ;;  %590 = vmatpush.msra.mxu2 %v403_v24  ;;  %v523_v0 = vld [vmem:[#allocation2 + $0x400] sm:$0xff]  ;;  %v409_v22 = vld [vmem:[#allocation2 + $0x70] sm:$0xff]  ;;  %v500_v23 = vld [vmem:[#allocation2 + $0x348] sm:$0xff] }
  0x5d   :  { %644 = vmatpush.msra.mxu3 %v428_v9  ;;  %630 = vmatpush.msra.mxu1 %v531_v35  ;;  %v405_v24 = vld [vmem:[#allocation2 + $0x50] sm:$0xff]  ;;  %v496_v9 = vld [vmem:[#allocation2 + $0x328] sm:$0xff] }
  0x5e   :  { %601 = vmatpush.msrb.mxu0 %v503_v26  ;;  %591 = vmatpush.msra.mxu2 %v399_v27  ;;  %v401_v25 = vld [vmem:[#allocation2 + $0x30] sm:$0xff]  ;;  %v492_v26 = vld [vmem:[#allocation2 + $0x308] sm:$0xff] }
  0x5f   :  { %645 = vmatpush.msra.mxu3 %v424_v28  ;;  %631 = vmatpush.msra.mxu1 %v527_v39  ;;  %v397_v27 = vld [vmem:[#allocation2 + $0x10] sm:$0xff]  ;;  %v488_v28 = vld [vmem:[#allocation2 + $0x2e8] sm:$0xff] }
  0x60   :  { %602 = vmatpush.msrb.mxu0 %v499_v30  ;;  %592 = vmatpush.msra.mxu2 %v395_v31  ;;  %v484_v29 = vld [vmem:[#allocation2 + $0x2c8] sm:$0xff] }
  0x61   :  { %646 = vmatpush.msra.mxu3 %v420_v32  ;;  %632 = vmatpush.msra.mxu1 %v523_v0  ;;  %v480_v30 = vld [vmem:[#allocation2 + $0x2a8] sm:$0xff]  ;;  %v1752_v32 = vld [vmem:[%s2043_s3] sm:$0x7] }
  0x62   :  { %685 = vmatpush.msrb.mxu2 %v552_v33  ;;  %603 = vmatpush.msrb.mxu0 %v495_v34  ;;  %v476_v31 = vld [vmem:[#allocation2 + $0x288] sm:$0xff]  ;;  %v193_v34 = vperm.slane %v1752_v32, 0 }
  0x63   :  { %647 = vmatpush.msra.mxu3 %v416_v36  ;;  %657 = vmatpush.msrb.mxu1 %v520_v4  ;;  %v472_v33 = vld [vmem:[#allocation2 + $0x268] sm:$0xff]  ;;  %v506_v4 = vld [vmem:[#allocation2 + $0x378] sm:$0xff] }
  0x64   :  { %686 = vmatpush.msrb.mxu2 %v548_v37  ;;  %604 = vmatpush.msrb.mxu0 %v491_v38  ;;  %v468_v35 = vld [vmem:[#allocation2 + $0x248] sm:$0xff]  ;;  %v392_v38 = vld [vmem:[%s2041_s1] sm:$0x3] }
  0x65   :  { %648 = vmatpush.msra.mxu3 %v412_v40  ;;  %658 = vmatpush.msrb.mxu1 %v516_v8  ;;  %v464_v36 = vld [vmem:[#allocation2 + $0x228] sm:$0xff]  ;;  %v550_v8 = vld [vmem:[#allocation2 + $0x4d8] sm:$0xff] }
  0x66   :  { %687 = vmatpush.msrb.mxu2 %v544_v41  ;;  %605 = vmatpush.msrb.mxu0 %v487_v42  ;;  %v1298_v41 = vmov 0   ;;  %v393_v42 = vmul.f32 0.25, %v392_v38 }
  0x67   :  { %649 = vmatpush.msra.mxu3 %v408_v43  ;;  %659 = vmatpush.msrb.mxu1 %v512_v13  ;;  %v460_v43 = vld [vmem:[#allocation2 + $0x208] sm:$0xff]  ;;  %v493_v13 = vld [vmem:[#allocation2 + $0x310] sm:$0xff] }
  0x68   :  { %606 = vmatpush.msrb.mxu0 %v483_v44  ;;  %688 = vmatpush.msrb.mxu2 %v540_v1  ;;  %v505_v1 = vld [vmem:[#allocation2 + $0x370] sm:$0xff] }
  0x69   :  { %650 = vmatpush.msra.mxu3 %v404_v45  ;;  %660 = vmatpush.msrb.mxu1 %v508_v17  ;;  %v1301_v17 = vmov 3  }
  0x6a   :  { %607 = vmatpush.msrb.mxu0 %v479_v46  ;;  %689 = vmatpush.msrb.mxu2 %v536_v5  ;;  %v554_v5 = vld [vmem:[#allocation2 + $0x4f8] sm:$0xff] }
  0x6b   :  { %651 = vmatpush.msra.mxu3 %v400_v47  ;;  %661 = vmatpush.msrb.mxu1 %v504_v21  ;;  %v194_v47 = vperm.slane %v1752_v32, 1 }
  0x6c   :  { %608 = vmatpush.msrb.mxu0 %v475_v48  ;;  %690 = vmatpush.msrb.mxu2 %v532_v10  ;;  %v497_v10 = vld [vmem:[#allocation2 + $0x330] sm:$0xff] }
  0x6d   :  { %652 = vmatpush.msra.mxu3 %v396_v49  ;;  %662 = vmatpush.msrb.mxu1 %v500_v23  ;;  %v521_v49 = vld [vmem:[#allocation2 + $0x3f0] sm:$0xff] }
  0x6e   :  { %609 = vmatpush.msrb.mxu0 %v471_v50  ;;  %691 = vmatpush.msrb.mxu2 %v528_v14  ;;  %v522_v50 = vld [vmem:[#allocation2 + $0x3f8] sm:$0xff]  ;;  %v195_v14 = vperm.slane %v1752_v32, 2 }
  0x6f   :  { %745 = vmatpush.msrb.mxu3 %v553_v51  ;;  %663 = vmatpush.msrb.mxu1 %v496_v9  ;;  %v534_v9 = vld [vmem:[#allocation2 + $0x458] sm:$0xff] }
  0x70   :  { %610 = vmatpush.msrb.mxu0 %v467_v52  ;;  %692 = vmatpush.msrb.mxu2 %v524_v18  ;;  %v517_v52 = vld [vmem:[#allocation2 + $0x3d0] sm:$0xff]  ;;  %v478_v32 = vld [vmem:[#allocation2 + $0x298] sm:$0xff] }
  0x71   :  { %746 = vmatpush.msrb.mxu3 %v549_v53  ;;  %664 = vmatpush.msrb.mxu1 %v492_v26  ;;  %v518_v53 = vld [vmem:[#allocation2 + $0x3d8] sm:$0xff]  ;;  %v489_v18 = vld [vmem:[#allocation2 + $0x2f0] sm:$0xff] }
  0x72   :  { %611 = vmatpush.msrb.mxu0 %v463_v54  ;;  %1231 = vset.pattern.permute.xlu0 %v1298_v41  ;;  %v394_v54 = vmul.f32 0.055555556, %v392_v38  ;;  %v474_v38 = vld [vmem:[#allocation2 + $0x278] sm:$0xff] }
  0x73   :  { %747 = vmatpush.msrb.mxu3 %v545_v55  ;;  %665 = vmatpush.msrb.mxu1 %v488_v28  ;;  %v530_v28 = vld [vmem:[#allocation2 + $0x438] sm:$0xff] }
  0x74   :  { %612 = vmatpush.msrb.mxu0 %v459_v56  ;;  %558 = vperm.xlu0 %1231, %v393_v42   ;;  %v470_v41 = vld [vmem:[#allocation2 + $0x258] sm:$0xff] }
  0x75   :  { %748 = vmatpush.msrb.mxu3 %v541_v3  ;;  %666 = vmatpush.msrb.mxu1 %v484_v29 }
  0x76   :  { %697 = vmatpush.msra.mxu0 %v457_v57  ;;  %v513_v57 = vld [vmem:[#allocation2 + $0x3b0] sm:$0xff] }
  0x77   :  { %749 = vmatpush.msrb.mxu3 %v537_v7  ;;  %667 = vmatpush.msrb.mxu1 %v480_v30  ;;  %v502_v7 = vld [vmem:[#allocation2 + $0x358] sm:$0xff]  ;;  %v477_v30 = vld [vmem:[#allocation2 + $0x290] sm:$0xff] }
  0x78   :  { %698 = vmatpush.msra.mxu0 %v453_v58  ;;  %v514_v58 = vld [vmem:[#allocation2 + $0x3b8] sm:$0xff] }
  0x79   :  { %750 = vmatpush.msrb.mxu3 %v533_v12  ;;  %668 = vmatpush.msrb.mxu1 %v476_v31  ;;  %v546_v12 = vld [vmem:[#allocation2 + $0x4b8] sm:$0xff] }
  0x7a   :  { %699 = vmatpush.msra.mxu0 %v449_v59  ;;  %v1299_v59 = vmov 2  }
  0x7b   :  { %751 = vmatpush.msrb.mxu3 %v529_v16  ;;  %669 = vmatpush.msrb.mxu1 %v472_v33  ;;  %v542_v16 = vld [vmem:[#allocation2 + $0x498] sm:$0xff] }
  0x7c   :  { %700 = vmatpush.msra.mxu0 %v445_v60  ;;  %1233 = vset.pattern.permute.xlu1 %v1299_v59  ;;  %v526_v33 = vld [vmem:[#allocation2 + $0x418] sm:$0xff] }
  0x7d   :  { %752 = vmatpush.msrb.mxu3 %v525_v20  ;;  %670 = vmatpush.msrb.mxu1 %v468_v35  ;;  %v538_v20 = vld [vmem:[#allocation2 + $0x478] sm:$0xff]  ;;  %v473_v35 = vld [vmem:[#allocation2 + $0x270] sm:$0xff] }
  0x7e   :  { %701 = vmatpush.msra.mxu0 %v441_v61  ;;  %844 = vperm.xlu1 %1233, %v394_v54   ;;  %v430_v59 = vld [vmem:[#allocation2 + $0x118] sm:$0xff] }
  0x7f   :  { %671 = vmatpush.msrb.mxu1 %v464_v36 }
  0x80   :  { %702 = vmatpush.msra.mxu0 %v437_v62  ;;  %v509_v62 = vld [vmem:[#allocation2 + $0x390] sm:$0xff] }
  0x81   :  { %672 = vmatpush.msrb.mxu1 %v460_v43  ;;  %v465_v43 = vld [vmem:[#allocation2 + $0x230] sm:$0xff] }
  0x82   :  { %703 = vmatpush.msra.mxu0 %v433_v63  ;;  %v510_v63 = vld [vmem:[#allocation2 + $0x398] sm:$0xff] }
  0x84   :  { %704 = vmatpush.msra.mxu0 %v429_v2  ;;  %v1300_v2 = vmov 1  }
  0x85   :  { %1232 = vset.pattern.permute.xlu0 %v1300_v2  ;;  %v931_v2 = vld [vmem:[#allocation4 + $0xc8] sm:$0xff] }
  0x86   :  { %705 = vmatpush.msra.mxu0 %v425_v6  ;;  %v501_v6 = vld [vmem:[#allocation2 + $0x350] sm:$0xff]  ;;  %820 = vperm.xlu0 %1232, %v393_v42   ;;  %v450_v42 = vld [vmem:[#allocation2 + $0x1b8] sm:$0xff] }
  0x87   :  { %1234 = vset.pattern.permute.xlu1 %v1301_v17 }
  0x88   :  { %706 = vmatpush.msra.mxu0 %v421_v11  ;;  %v498_v11 = vld [vmem:[#allocation2 + $0x338] sm:$0xff]  ;;  %867 = vperm.xlu1 %1234, %v394_v54   ;;  %v935_v54 = vld [vmem:[#allocation4 + $0xe8] sm:$0xff] }
  0x8a   :  { %707 = vmatpush.msra.mxu0 %v417_v15  ;;  %v494_v15 = vld [vmem:[#allocation2 + $0x318] sm:$0xff] }
  0x8c   :  { %708 = vmatpush.msra.mxu0 %v413_v19  ;;  %v490_v19 = vld [vmem:[#allocation2 + $0x2f8] sm:$0xff] }
  0x8e   :  { %709 = vmatpush.msra.mxu0 %v409_v22  ;;  %v485_v22 = vld [vmem:[#allocation2 + $0x2d0] sm:$0xff]  ;;  %1235 = vset.pattern.permute.xlu0 %v1301_v17  ;;  %v398_v17 = vld [vmem:[#allocation2 + $0x18] sm:$0xff] }
  0x90   :  { %710 = vmatpush.msra.mxu0 %v405_v24  ;;  %v486_v24 = vld [vmem:[#allocation2 + $0x2d8] sm:$0xff] }
  0x92   :  { %711 = vmatpush.msra.mxu0 %v401_v25  ;;  %v481_v25 = vld [vmem:[#allocation2 + $0x2b0] sm:$0xff] }
  0x94   :  { %712 = vmatpush.msra.mxu0 %v397_v27  ;;  %v482_v27 = vld [vmem:[#allocation2 + $0x2b8] sm:$0xff] }
  0xb3   :  { %v226_v37 = vpop.f32.mrf.mxu0  ;;  %v266_v40 = vpop.f32.mrf.mxu2 }
  0xb4   :  { %v227_v39 = vadd.f32 %v226_v37, %v193_v34  ;;  %v458_v37 = vld [vmem:[#allocation2 + $0x1f8] sm:$0xff] }
  0xb5   :  { %v246_v44 = vpop.f32.mrf.mxu1 }
  0xb6   :  { %v247_v45 = vadd.f32 %v246_v44, %v227_v39  ;;  %v454_v39 = vld [vmem:[#allocation2 + $0x1d8] sm:$0xff] }
  0xb7   :  { %v937_v44 = vld [vmem:[#allocation4 + $0xf8] sm:$0xff] }
  0xb8   :  { %v267_v46 = vadd.f32 %v266_v40, %v247_v45  ;;  %v469_v40 = vld [vmem:[#allocation2 + $0x250] sm:$0xff]  ;;  %v466_v45 = vld [vmem:[#allocation2 + $0x238] sm:$0xff] }
  0xba   :  { %v1759_v48 = vmax.f32 %v267_v46, 0.0  ;;  %v936_v46 = vld [vmem:[#allocation4 + $0xf0] sm:$0xff] }
  0xbc   :  { %593 = vmatmul.f32.vlgmr.msra.gmra.mxu2 %v1759_v48  ;;  %653 = vmatmul.f32.vlgmr.msra.gmra.mxu3 %v1759_v48 }
  0xbd   :  { %v286_v51 = vpop.f32.mrf.mxu3  ;;  %717 = vmatpush.msra.mxu2 %v521_v49  ;;  %777 = vmatpush.msra.mxu3 %v522_v50  ;;  %v461_v49 = vld [vmem:[#allocation2 + $0x210] sm:$0xff]  ;;  %v462_v50 = vld [vmem:[#allocation2 + $0x218] sm:$0xff] }
  0xbe   :  { %v287_v55 = vadd.f32 %v286_v51, %v194_v47  ;;  %v446_v47 = vld [vmem:[#allocation2 + $0x198] sm:$0xff] }
  0xbf   :  { %v306_v56 = vpop.f32.mrf.mxu2  ;;  %718 = vmatpush.msra.mxu2 %v517_v52  ;;  %778 = vmatpush.msra.mxu3 %v518_v53  ;;  %v442_v51 = vld [vmem:[#allocation2 + $0x178] sm:$0xff] }
  0xc0   :  { %v307_v60 = vadd.f32 %v306_v56, %v287_v55  ;;  %v921_v52 = vld [vmem:[#allocation4 + $0x78] sm:$0xff]  ;;  %v920_v55 = vld [vmem:[#allocation4 + $0x70] sm:$0xff] }
  0xc1   :  { %v326_v61 = vpop.f32.mrf.mxu0  ;;  %719 = vmatpush.msra.mxu2 %v513_v57  ;;  %779 = vmatpush.msra.mxu3 %v514_v58  ;;  %v438_v53 = vld [vmem:[#allocation2 + $0x158] sm:$0xff]  ;;  %v934_v57 = vld [vmem:[#allocation4 + $0xe0] sm:$0xff]  ;;  %v919_v58 = vld [vmem:[#allocation4 + $0x68] sm:$0xff] }
  0xc2   :  { %v327_v0 = vadd.f32 %v326_v61, %v307_v60  ;;  %v434_v56 = vld [vmem:[#allocation2 + $0x138] sm:$0xff]  ;;  %v918_v61 = vld [vmem:[#allocation4 + $0x60] sm:$0xff] }
  0xc3   :  { %720 = vmatpush.msra.mxu2 %v509_v62  ;;  %780 = vmatpush.msra.mxu3 %v510_v63  ;;  %v933_v60 = vld [vmem:[#allocation4 + $0xd8] sm:$0xff]  ;;  %v932_v63 = vld [vmem:[#allocation4 + $0xd0] sm:$0xff] }
  0xc4   :  { %v1763_v3 = vmax.f32 %v327_v0, 0.0  ;;  %v426_v62 = vld [vmem:[#allocation2 + $0xf8] sm:$0xff] }
  0xc5   :  { %721 = vmatpush.msra.mxu2 %v505_v1  ;;  %781 = vmatpush.msra.mxu3 %v506_v4  ;;  %v917_v0 = vld [vmem:[#allocation4 + $0x58] sm:$0xff]  ;;  %v916_v4 = vld [vmem:[#allocation4 + $0x50] sm:$0xff] }
  0xc6   :  { %613 = vmatmul.f32.vlgmr.msrb.gmra.mxu0 %v1763_v3  ;;  %v422_v1 = vld [vmem:[#allocation2 + $0xd8] sm:$0xff] }
  0xc7   :  { %805 = vmatpush.msrb.mxu0 %v554_v5  ;;  %722 = vmatpush.msra.mxu2 %v501_v6  ;;  %v418_v5 = vld [vmem:[#allocation2 + $0xb8] sm:$0xff]  ;;  %v930_v6 = vld [vmem:[#allocation4 + $0xc0] sm:$0xff] }
  0xc8   :  { %782 = vmatpush.msra.mxu3 %v502_v7  ;;  %v915_v7 = vld [vmem:[#allocation4 + $0x48] sm:$0xff] }
  0xc9   :  { %806 = vmatpush.msrb.mxu0 %v550_v8  ;;  %723 = vmatpush.msra.mxu2 %v497_v10  ;;  %v414_v8 = vld [vmem:[#allocation2 + $0x98] sm:$0xff]  ;;  %v914_v10 = vld [vmem:[#allocation4 + $0x40] sm:$0xff] }
  0xca   :  { %783 = vmatpush.msra.mxu3 %v498_v11  ;;  %v410_v11 = vld [vmem:[#allocation2 + $0x78] sm:$0xff] }
  0xcb   :  { %807 = vmatpush.msrb.mxu0 %v546_v12  ;;  %724 = vmatpush.msra.mxu2 %v493_v13  ;;  %v913_v12 = vld [vmem:[#allocation4 + $0x38] sm:$0xff] }
  0xcc   :  { %784 = vmatpush.msra.mxu3 %v494_v15  ;;  %v406_v13 = vld [vmem:[#allocation2 + $0x58] sm:$0xff] }
  0xcd   :  { %v346_v21 = vpop.f32.mrf.mxu1  ;;  %808 = vmatpush.msrb.mxu0 %v542_v16  ;;  %725 = vmatpush.msra.mxu2 %v489_v18  ;;  %v402_v15 = vld [vmem:[#allocation2 + $0x38] sm:$0xff]  ;;  %v911_v16 = vld [vmem:[#allocation4 + $0x28] sm:$0xff]  ;;  %v910_v18 = vld [vmem:[#allocation4 + $0x20] sm:$0xff] }
  0xce   :  { %v347_v23 = vadd.f32 %v346_v21, %v195_v14  ;;  %713 = vmatmul.f32.vlgmr.msra.gmra.mxu0 %v1759_v48  ;;  %785 = vmatpush.msra.mxu3 %v490_v19  ;;  %v912_v14 = vld [vmem:[#allocation4 + $0x30] sm:$0xff]  ;;  %v909_v19 = vld [vmem:[#allocation4 + $0x18] sm:$0xff] }
  0xcf   :  { %809 = vmatpush.msrb.mxu0 %v538_v20  ;;  %726 = vmatpush.msra.mxu2 %v485_v22  ;;  %v908_v20 = vld [vmem:[#allocation4 + $0x10] sm:$0xff]  ;;  %v929_v21 = vld [vmem:[#allocation4 + $0xb8] sm:$0xff]  ;;  %v907_v22 = vld [vmem:[#allocation4 + $0x8] sm:$0xff] }
  0xd0   :  { %v366_v26 = vpop.f32.mrf.mxu3  ;;  %786 = vmatpush.msra.mxu3 %v486_v24  ;;  %v906_v24 = vld [vmem:[#allocation4] sm:$0xff] }
  0xd1   :  { %v367_v29 = vadd.f32 %v366_v26, %v347_v23  ;;  %810 = vmatpush.msrb.mxu0 %v534_v9  ;;  %727 = vmatpush.msra.mxu2 %v481_v25  ;;  %v928_v23 = vld [vmem:[#allocation4 + $0xb0] sm:$0xff]  ;;  %v927_v9 = vld [vmem:[#allocation4 + $0xa8] sm:$0xff]  ;;  %v953_v26 = vld [vmem:[#allocation4 + $0x178] sm:$0xff] }
  0xd2   :  { %v386_v31 = vpop.f32.mrf.mxu0  ;;  %787 = vmatpush.msra.mxu3 %v482_v27  ;;  %v1086_v25 = vld [vmem:[%s2048_s8 + $0x78] sm:$0xff]  ;;  %v926_v27 = vld [vmem:[#allocation4 + $0xa0] sm:$0xff] }
  0xd3   :  { %v387_v34 = vadd.f32 %v386_v31, %v367_v29  ;;  %811 = vmatpush.msrb.mxu0 %v530_v28  ;;  %728 = vmatpush.msra.mxu2 %v477_v30  ;;  %v1085_v28 = vld [vmem:[%s2048_s8 + $0x70] sm:$0xff]  ;;  %v925_v29 = vld [vmem:[#allocation4 + $0x98] sm:$0xff]  ;;  %v952_v30 = vld [vmem:[#allocation4 + $0x170] sm:$0xff] }
  0xd4   :  { %788 = vmatpush.msra.mxu3 %v478_v32  ;;  %v1084_v31 = vld [vmem:[%s2048_s8 + $0x68] sm:$0xff]  ;;  %v924_v32 = vld [vmem:[#allocation4 + $0x90] sm:$0xff] }
  0xd5   :  { %v1768_v36 = vmax.f32 %v387_v34, 0.0  ;;  %812 = vmatpush.msrb.mxu0 %v526_v33  ;;  %729 = vmatpush.msra.mxu2 %v473_v35  ;;  %v951_v33 = vld [vmem:[#allocation4 + $0x168] sm:$0xff]  ;;  %v1083_v34 = vld [vmem:[%s2048_s8 + $0x60] sm:$0xff] }
  0xd6   :  { %789 = vmatpush.msra.mxu3 %v474_v38  ;;  %v923_v35 = vld [vmem:[#allocation4 + $0x88] sm:$0xff]  ;;  %v1082_v38 = vld [vmem:[%s2048_s8 + $0x58] sm:$0xff] }
  0xd7   :  { %1212 = vmatmul.msk.f32.vlgmr.msra.gmra.mxu1 %vm206_vm0, %v1768_v36  ;;  %1213 = vmatmul.msk.f32.vlgmr.msrb.gmra.mxu2 %vm206_vm0, %v1768_v36 }
  0xd8   :  { %1214 = vmatmul.msk.f32.vlgmr.msrb.gmra.mxu3 %vm206_vm0, %v1768_v36  ;;  %757 = vmatpush.msra.mxu1 %v458_v37  ;;  %v950_v37 = vld [vmem:[#allocation4 + $0x160] sm:$0xff] }
  0xd9   :  { %1215 = vmatmul.msk.f32.vlgmr.msrb.gmra.mxu0 %vm206_vm0, %v1768_v36  ;;  %730 = vmatpush.msra.mxu2 %v469_v40  ;;  %v949_v40 = vld [vmem:[#allocation4 + $0x158] sm:$0xff] }
  0xda   :  { %758 = vmatpush.msra.mxu1 %v454_v39  ;;  %790 = vmatpush.msra.mxu3 %v470_v41  ;;  %v922_v39 = vld [vmem:[#allocation4 + $0x80] sm:$0xff]  ;;  %v1081_v41 = vld [vmem:[%s2048_s8 + $0x50] sm:$0xff] }
  0xdb   :  { %994 = vmatpush.msra.mxu0 %v937_v44  ;;  %731 = vmatpush.msra.mxu2 %v465_v43  ;;  %v948_v43 = vld [vmem:[#allocation4 + $0x150] sm:$0xff]  ;;  %v1080_v44 = vld [vmem:[%s2048_s8 + $0x48] sm:$0xff] }
  0xdc   :  { %759 = vmatpush.msra.mxu1 %v450_v42  ;;  %791 = vmatpush.msra.mxu3 %v466_v45  ;;  %v1102_v42 = vld [vmem:[%s2048_s8 + $0xf8] sm:$0xff]  ;;  %v1101_v45 = vld [vmem:[%s2048_s8 + $0xf0] sm:$0xff] }
  0xdd   :  { %995 = vmatpush.msra.mxu0 %v936_v46  ;;  %732 = vmatpush.msra.mxu2 %v461_v49  ;;  %v947_v46 = vld [vmem:[#allocation4 + $0x148] sm:$0xff]  ;;  %v1100_v49 = vld [vmem:[%s2048_s8 + $0xe8] sm:$0xff] }
  0xde   :  { %760 = vmatpush.msra.mxu1 %v446_v47  ;;  %792 = vmatpush.msra.mxu3 %v462_v50  ;;  %v1079_v47 = vld [vmem:[%s2048_s8 + $0x40] sm:$0xff]  ;;  %v946_v50 = vld [vmem:[#allocation4 + $0x140] sm:$0xff] }
  0xdf   :  { %673 = vmatmul.f32.vlgmr.msrb.gmra.mxu1 %v1763_v3  ;;  %733 = vmatmul.f32.vlgmr.msra.gmra.mxu2 %v1763_v3 }
  0xe0   :  { %761 = vmatpush.msra.mxu1 %v442_v51  ;;  %793 = vmatmul.f32.vlgmr.msra.gmra.mxu3 %v1763_v3  ;;  %v1078_v51 = vld [vmem:[%s2048_s8 + $0x38] sm:$0xff] }
  0xe1   :  { %974 = vmatpush.msrb.mxu2 %v921_v52  ;;  %996 = vmatpush.msra.mxu0 %v935_v54  ;;  %v1099_v52 = vld [vmem:[%s2048_s8 + $0xe0] sm:$0xff]  ;;  %v1077_v54 = vld [vmem:[%s2048_s8 + $0x30] sm:$0xff] }
  0xe2   :  { %762 = vmatpush.msra.mxu1 %v438_v53  ;;  %v945_v53 = vld [vmem:[#allocation4 + $0x138] sm:$0xff] }
  0xe3   :  { %975 = vmatpush.msrb.mxu2 %v920_v55  ;;  %997 = vmatpush.msra.mxu0 %v934_v57  ;;  %v1098_v55 = vld [vmem:[%s2048_s8 + $0xd8] sm:$0xff]  ;;  %v1076_v57 = vld [vmem:[%s2048_s8 + $0x28] sm:$0xff] }
  0xe4   :  { %763 = vmatpush.msra.mxu1 %v434_v56  ;;  %v944_v56 = vld [vmem:[#allocation4 + $0x130] sm:$0xff] }
  0xe5   :  { %976 = vmatpush.msrb.mxu2 %v919_v58  ;;  %998 = vmatpush.msra.mxu0 %v933_v60  ;;  %v1097_v58 = vld [vmem:[%s2048_s8 + $0xd0] sm:$0xff]  ;;  %v1075_v60 = vld [vmem:[%s2048_s8 + $0x20] sm:$0xff] }
  0xe6   :  { %764 = vmatpush.msra.mxu1 %v430_v59  ;;  %v943_v59 = vld [vmem:[#allocation4 + $0x128] sm:$0xff] }
  0xe7   :  { %977 = vmatpush.msrb.mxu2 %v918_v61  ;;  %999 = vmatpush.msra.mxu0 %v932_v63  ;;  %v1096_v61 = vld [vmem:[%s2048_s8 + $0xc8] sm:$0xff]  ;;  %v1074_v63 = vld [vmem:[%s2048_s8 + $0x18] sm:$0xff] }
  0xe8   :  { %765 = vmatpush.msra.mxu1 %v426_v62  ;;  %v942_v62 = vld [vmem:[#allocation4 + $0x120] sm:$0xff] }
  0xe9   :  { %978 = vmatpush.msrb.mxu2 %v917_v0  ;;  %1000 = vmatpush.msra.mxu0 %v931_v2  ;;  %v1095_v0 = vld [vmem:[%s2048_s8 + $0xc0] sm:$0xff] }
  0xea   :  { %766 = vmatpush.msra.mxu1 %v422_v1  ;;  %v1848_v1 = vld [vmem:[%s2045_s5] ss:$8 sm:$0xf] }
  0xeb   :  { %979 = vmatpush.msrb.mxu2 %v916_v4  ;;  %1001 = vmatpush.msra.mxu0 %v930_v6  ;;  %v941_v2 = vld [vmem:[#allocation4 + $0x118] sm:$0xff]  ;;  %v1073_v4 = vld [vmem:[%s2048_s8 + $0x10] sm:$0xff]  ;;  %v940_v6 = vld [vmem:[#allocation4 + $0x110] sm:$0xff] }
  0xec   :  { %767 = vmatpush.msra.mxu1 %v418_v5  ;;  %v1094_v5 = vld [vmem:[%s2048_s8 + $0xb8] sm:$0xff] }
  0xed   :  { %980 = vmatpush.msrb.mxu2 %v915_v7  ;;  %1002 = vmatpush.msra.mxu0 %v929_v21  ;;  %v969_v7 = vld [vmem:[#allocation4 + $0x1f8] sm:$0xff] }
  0xee   :  { %768 = vmatpush.msra.mxu1 %v414_v8  ;;  %v562_v8 = vperm.slane %v1848_v1, 0  ;;  %1034 = vmatpush.msrb.mxu3 %v969_v7  ;;  %v1091_v21 = vld [vmem:[%s2048_s8 + $0xa0] sm:$0xff]  ;;  %v959_v7 = vld [vmem:[#allocation4 + $0x1a8] sm:$0xff] }
  0xef   :  { %981 = vmatpush.msrb.mxu2 %v914_v10  ;;  %1003 = vmatpush.msra.mxu0 %v928_v23  ;;  %v1072_v10 = vld [vmem:[%s2048_s8 + $0x8] sm:$0xff] }
  0xf0   :  { %769 = vmatpush.msra.mxu1 %v410_v11  ;;  %v1093_v11 = vld [vmem:[%s2048_s8 + $0xb0] sm:$0xff] }
  0xf1   :  { %982 = vmatpush.msrb.mxu2 %v913_v12  ;;  %1004 = vmatpush.msra.mxu0 %v927_v9  ;;  %v1863_v12 = vpop.permute.xlu0 %558  ;;  %v966_v9 = vld [vmem:[#allocation4 + $0x1e0] sm:$0xff] }
  0xf2   :  { %770 = vmatpush.msra.mxu1 %v406_v13  ;;  %v939_v13 = vld [vmem:[#allocation4 + $0x108] sm:$0xff] }
  0xf3   :  { %983 = vmatpush.msrb.mxu2 %v912_v14  ;;  %1005 = vmatpush.msra.mxu0 %v926_v27  ;;  %v968_v14 = vld [vmem:[#allocation4 + $0x1f0] sm:$0xff]  ;;  %v965_v27 = vld [vmem:[#allocation4 + $0x1d8] sm:$0xff] }
  0xf4   :  { %771 = vmatpush.msra.mxu1 %v402_v15  ;;  %1035 = vmatpush.msrb.mxu3 %v968_v14  ;;  %v1071_v15 = vld [vmem:[%s2048_s8] sm:$0xff]  ;;  %v958_v14 = vld [vmem:[#allocation4 + $0x1a0] sm:$0xff] }
  0xf5   :  { %984 = vmatpush.msrb.mxu2 %v911_v16  ;;  %1006 = vmatpush.msra.mxu0 %v925_v29  ;;  %v1092_v16 = vld [vmem:[%s2048_s8 + $0xa8] sm:$0xff] }
  0xf6   :  { %772 = vmatpush.msra.mxu1 %v398_v17  ;;  %v1871_v17 = vpop.permute.xlu1 %844  ;;  %v1108_v29 = vld [vmem:[%s2048_s8 + $0x128] sm:$0xff] }
  0xf7   :  { %773 = vmatmul.f32.vlgmr.msra.gmra.mxu1 %v1759_v48  ;;  %985 = vmatpush.msrb.mxu2 %v910_v18  ;;  %v938_v18 = vld [vmem:[#allocation4 + $0x100] sm:$0xff] }
  0xf8   :  { %1014 = vmatpush.msrb.mxu1 %v953_v26  ;;  %1007 = vmatpush.msra.mxu0 %v924_v32  ;;  %v1090_v26 = vld [vmem:[%s2048_s8 + $0x98] sm:$0xff] }
  0xf9   :  { %986 = vmatpush.msrb.mxu2 %v909_v19  ;;  %v967_v19 = vld [vmem:[#allocation4 + $0x1e8] sm:$0xff] }
  0xfa   :  { %1015 = vmatpush.msrb.mxu1 %v952_v30  ;;  %1008 = vmatpush.msra.mxu0 %v923_v35  ;;  %v964_v30 = vld [vmem:[#allocation4 + $0x1d0] sm:$0xff] }
  0xfb   :  { %987 = vmatpush.msrb.mxu2 %v908_v20  ;;  %v570_v20 = vmul.f32 %v562_v8, %v1863_v12  ;;  %1036 = vmatpush.msrb.mxu3 %v967_v19  ;;  %v1908_v35 = vld [vmem:[%s2045_s5 + $0x3] ss:$8 sm:$0xf] }
  0xfc   :  { %1016 = vmatpush.msrb.mxu1 %v951_v33  ;;  %1009 = vmatpush.msra.mxu0 %v922_v39  ;;  %v1089_v33 = vld [vmem:[%s2048_s8 + $0x90] sm:$0xff]  ;;  %v1088_v39 = vld [vmem:[%s2048_s8 + $0x88] sm:$0xff] }
  0xfd   :  { %988 = vmatpush.msrb.mxu2 %v907_v22  ;;  %v1110_v22 = vld [vmem:[%s2048_s8 + $0x138] sm:$0xff]  ;;  %1037 = vmatpush.msrb.mxu3 %v966_v9 }
  0xfe   :  { %1017 = vmatpush.msrb.mxu1 %v950_v37  ;;  %1131 = vmatpush.msrb.mxu0 %v1102_v42  ;;  %v1107_v37 = vld [vmem:[%s2048_s8 + $0x120] sm:$0xff]  ;;  %v1106_v42 = vld [vmem:[%s2048_s8 + $0x118] sm:$0xff] }
  0xff   :  { %989 = vmatpush.msrb.mxu2 %v906_v24  ;;  %v1883_v24 = vld [vmem:[%s2045_s5 + $0x1] ss:$8 sm:$0xf]  ;;  %1038 = vmatpush.msrb.mxu3 %v965_v27 }
 0x100   :  { %1018 = vmatpush.msrb.mxu1 %v949_v40  ;;  %1132 = vmatpush.msrb.mxu0 %v1101_v45  ;;  %v824_v32 = vperm.slane %v1883_v24, 0  ;;  %v826_v27 = vperm.slane %v1883_v24, 2 }
 0x101   :  { %1111 = vmatpush.msra.mxu2 %v1086_v25  ;;  %v1109_v25 = vld [vmem:[%s2048_s8 + $0x130] sm:$0xff]  ;;  %1039 = vmatpush.msrb.mxu3 %v964_v30 }
 0x102   :  { %1019 = vmatpush.msrb.mxu1 %v948_v43  ;;  %1133 = vmatpush.msrb.mxu0 %v1100_v49  ;;  %v563_v43 = vperm.slane %v1848_v1, 1 }
 0x103   :  { %1112 = vmatpush.msra.mxu2 %v1085_v28  ;;  %v1894_v28 = vld [vmem:[%s2045_s5 + $0x2] ss:$8 sm:$0xf] }
 0x104   :  { %1020 = vmatpush.msrb.mxu1 %v947_v46  ;;  %1134 = vmatpush.msrb.mxu0 %v1099_v52  ;;  %v871_v46 = vperm.slane %v1908_v35, 0 }
 0x105   :  { %1113 = vmatpush.msra.mxu2 %v1084_v31 }
 0x106   :  { %1021 = vmatpush.msrb.mxu1 %v946_v50  ;;  %1135 = vmatpush.msrb.mxu0 %v1098_v55  ;;  %v1926_v50 = vpop.permute.xlu1 %867  ;;  %v1935_v55 = vld [vmem:[%s2045_s5 + $0x4] ss:$8 sm:$0xf] }
 0x107   :  { %1114 = vmatpush.msra.mxu2 %v1083_v34  ;;  %v1903_v34 = vpop.permute.xlu0 %820 }
 0x108   :  { %1022 = vmatpush.msrb.mxu1 %v945_v53  ;;  %1136 = vmatpush.msrb.mxu0 %v1097_v58  ;;  %v832_v45 = vmul.f32 %v824_v32, %v1903_v34 }
 0x109   :  { %1115 = vmatpush.msra.mxu2 %v1082_v38  ;;  %v848_v38 = vperm.slane %v1894_v28, 0 }
 0x10a   :  { %1023 = vmatpush.msrb.mxu1 %v944_v56  ;;  %1137 = vmatpush.msrb.mxu0 %v1096_v61  ;;  %v961_v56 = vld [vmem:[#allocation4 + $0x1b8] sm:$0xff] }
 0x10b   :  { %1116 = vmatpush.msra.mxu2 %v1081_v41  ;;  %v963_v41 = vld [vmem:[#allocation4 + $0x1c8] sm:$0xff]  ;;  %v856_v52 = vmul.f32 %v848_v38, %v1871_v17 }
 0x10c   :  { %1024 = vmatpush.msrb.mxu1 %v943_v59  ;;  %1138 = vmatpush.msrb.mxu0 %v1095_v0  ;;  %v879_v59 = vmul.f32 %v871_v46, %v1926_v50 }
 0x10d   :  { %1117 = vmatpush.msra.mxu2 %v1080_v44  ;;  %1040 = vmatpush.msrb.mxu3 %v963_v41  ;;  %v834_v41 = vmul.f32 %v826_v27, %v1903_v34  ;;  %v1237_v27 = vld [vmem:[%s2047_s7] ss:$0 sm:$0xff] }
 0x10e   :  { %1025 = vmatpush.msrb.mxu1 %v942_v62  ;;  %1139 = vmatpush.msrb.mxu0 %v1094_v5  ;;  %v960_v62 = vld [vmem:[#allocation4 + $0x1b0] sm:$0xff]  ;;  %v564_v5 = vperm.slane %v1848_v1, 2 }
 0x10f   :  { %1118 = vmatpush.msra.mxu2 %v1079_v47  ;;  %v1087_v47 = vld [vmem:[%s2048_s8 + $0x80] sm:$0xff] }
 0x110   :  { %1026 = vmatpush.msrb.mxu1 %v941_v2  ;;  %1140 = vmatpush.msrb.mxu0 %v1093_v11  ;;  %v890_v2 = vperm.slane %v1935_v55, 0 }
 0x111   :  { %1119 = vmatpush.msra.mxu2 %v1078_v51  ;;  %v962_v51 = vld [vmem:[#allocation4 + $0x1c0] sm:$0xff] }
 0x112   :  { %1027 = vmatpush.msrb.mxu1 %v940_v6  ;;  %1141 = vmatpush.msrb.mxu0 %v1092_v16  ;;  %v872_v16 = vperm.slane %v1908_v35, 1 }
 0x113   :  { %1120 = vmatpush.msra.mxu2 %v1077_v54  ;;  %1041 = vmatpush.msrb.mxu3 %v962_v51  ;;  %v1105_v54 = vld [vmem:[%s2048_s8 + $0x110] sm:$0xff] }
 0x114   :  { %1028 = vmatpush.msrb.mxu1 %v939_v13  ;;  %1142 = vmatpush.msrb.mxu0 %v1091_v21  ;;  %v572_v21 = vmul.f32 %v564_v5, %v1863_v12  ;;  %v880_v30 = vmul.f32 %v872_v16, %v1926_v50  ;;  %v1064_v16 = vld [vmem:[%s2049_s9 + $0x48] sm:$0xff] }
 0x115   :  { %1121 = vmatpush.msra.mxu2 %v1076_v57  ;;  %v571_v57 = vmul.f32 %v563_v43, %v1863_v12  ;;  %1042 = vmatpush.msrb.mxu3 %v961_v56  ;;  %v892_v56 = vperm.slane %v1935_v55, 2 }
 0x116   :  { %1029 = vmatpush.msrb.mxu1 %v938_v18  ;;  %1143 = vmatpush.msrb.mxu0 %v1090_v26 }
 0x117   :  { %1122 = vmatpush.msra.mxu2 %v1075_v60  ;;  %v1104_v60 = vld [vmem:[%s2048_s8 + $0x108] sm:$0xff]  ;;  %1043 = vmatpush.msrb.mxu3 %v960_v62 }
 0x118   :  { %1159 = vmatpush.msra.mxu1 %v1110_v22  ;;  %1144 = vmatpush.msrb.mxu0 %v1089_v33  ;;  %v956_v22 = vld [vmem:[#allocation4 + $0x190] sm:$0xff]  ;;  %v850_v33 = vperm.slane %v1894_v28, 2 }
 0x119   :  { %1123 = vmatpush.msra.mxu2 %v1074_v63  ;;  %v825_v63 = vperm.slane %v1883_v24, 1  ;;  %1044 = vmatpush.msrb.mxu3 %v959_v7  ;;  %v874_v7 = vperm.slane %v1908_v35, 3 }
 0x11a   :  { %1160 = vmatpush.msra.mxu1 %v1109_v25  ;;  %1145 = vmatpush.msrb.mxu0 %v1088_v39  ;;  %v858_v46 = vmul.f32 %v850_v33, %v1871_v17 }
 0x11b   :  { %1124 = vmatpush.msra.mxu2 %v1073_v4  ;;  %v1103_v4 = vld [vmem:[%s2048_s8 + $0x100] sm:$0xff]  ;;  %1045 = vmatpush.msrb.mxu3 %v958_v14 }
 0x11c   :  { %1161 = vmatpush.msra.mxu1 %v1108_v29  ;;  %1146 = vmatpush.msrb.mxu0 %v1087_v47  ;;  %v955_v29 = vld [vmem:[#allocation4 + $0x188] sm:$0xff] }
 0x11d   :  { %1125 = vmatpush.msra.mxu2 %v1072_v10  ;;  %v849_v10 = vperm.slane %v1894_v28, 1 }
 0x11e   :  { %1162 = vmatpush.msra.mxu1 %v1107_v37  ;;  %v954_v37 = vld [vmem:[#allocation4 + $0x180] sm:$0xff] }
 0x11f   :  { %1126 = vmatpush.msra.mxu2 %v1071_v15  ;;  %v833_v15 = vmul.f32 %v825_v63, %v1903_v34  ;;  %v857_v9 = vmul.f32 %v849_v10, %v1871_v17  ;;  %v827_v63 = vperm.slane %v1883_v24, 3  ;;  %v882_v10 = vmul.f32 %v874_v7, %v1926_v50 }
 0x120   :  { %1163 = vmatpush.msra.mxu1 %v1106_v42  ;;  %v873_v42 = vperm.slane %v1908_v35, 2  ;;  %v1070_v35 = vld [vmem:[%s2049_s9 + $0x78] sm:$0xff] }
 0x122   :  { %1164 = vmatpush.msra.mxu1 %v1105_v54  ;;  %v881_v51 = vmul.f32 %v873_v42, %v1926_v50  ;;  %v1067_v50 = vld [vmem:[%s2049_s9 + $0x60] sm:$0xff] }
 0x124   :  { %1165 = vmatpush.msra.mxu1 %v1104_v60 }
 0x126   :  { %1166 = vmatpush.msra.mxu1 %v1103_v4 }
 0x13f   :  { %v594_v23 = vpop.f32.mrf.mxu2  ;;  %v654_v61 = vpop.f32.mrf.mxu3 }
 0x140   :  { %v595_v31 = vadd.f32 %v594_v23, %v570_v20  ;;  %v655_v8 = vadd.f32 %v654_v61, %v571_v57  ;;  %v957_v20 = vld [vmem:[#allocation4 + $0x198] sm:$0xff] }
 0x141   :  { %1046 = vmatpush.msrb.mxu3 %v957_v20  ;;  %v1061_v20 = vld [vmem:[%s2049_s9 + $0x30] sm:$0xff] }
 0x143   :  { %v614_v40 = vpop.f32.mrf.mxu0  ;;  %1047 = vmatpush.msrb.mxu3 %v956_v22  ;;  %v1059_v22 = vld [vmem:[%s2049_s9 + $0x20] sm:$0xff] }
 0x144   :  { %v615_v44 = vadd.f32 %v614_v40, %v595_v31  ;;  %v891_v40 = vperm.slane %v1935_v55, 1 }
 0x145   :  { %1048 = vmatpush.msrb.mxu3 %v955_v29 }
 0x147   :  { %1049 = vmatpush.msrb.mxu3 %v954_v37 }
 0x149   :  { %1171 = vmatpush.msra.mxu3 %v1070_v35 }
 0x14b   :  { %v714_v23 = vpop.f32.mrf.mxu0 }
 0x14c   :  { %v715_v32 = vadd.f32 %v714_v23, %v572_v21  ;;  %v1060_v21 = vld [vmem:[%s2049_s9 + $0x28] sm:$0xff]  ;;  %v1058_v23 = vld [vmem:[%s2049_s9 + $0x18] sm:$0xff] }
 0x154   :  { %v634_v49 = vpop.f32.mrf.mxu1 }
 0x155   :  { %v635_v53 = vadd.f32 %v634_v49, %v615_v44 }
 0x156   :  { %v814_v5 = vpop.f32.mrf.mxu0 }
 0x157   :  { %v836_v58 = vadd.f32 %v832_v45, %v635_v53 }
 0x159   :  { %v860_v0 = vadd.f32 %v856_v52, %v836_v58 }
 0x15a   :  { %v694_v6 = vpop.f32.mrf.mxu2 }
 0x15b   :  { %v883_v11 = vadd.f32 %v879_v59, %v860_v0  ;;  %v754_v44 = vpop.f32.mrf.mxu3  ;;  %v565_v59 = vperm.slane %v1848_v1, 3 }
 0x15c   :  { %v674_v13 = vpop.f32.mrf.mxu1 }
 0x15d   :  { %v898_v18 = vadd.f32 %v890_v2, %v883_v11  ;;  %v675_v19 = vadd.f32 %v674_v13, %v655_v8  ;;  %v573_v61 = vmul.f32 %v565_v59, %v1863_v12  ;;  %v851_v2 = vperm.slane %v1894_v28, 3 }
 0x15e   :  { %v893_v11 = vperm.slane %v1935_v55, 3  ;;  %v1066_v55 = vld [vmem:[%s2049_s9 + $0x58] sm:$0xff] }
 0x15f   :  { %v695_v25 = vadd.f32 %v694_v6, %v675_v19  ;;  %v902_v26 = vmax.f32 %v898_v18, 0.0  ;;  %v835_v6 = vmul.f32 %v827_v63, %v1903_v34  ;;  %v859_v8 = vmul.f32 %v851_v2, %v1871_v17  ;;  %v1068_v17 = vld [vmem:[%s2049_s9 + $0x68] sm:$0xff]  ;;  %v1063_v18 = vld [vmem:[%s2049_s9 + $0x40] sm:$0xff]  ;;  %v1062_v19 = vld [vmem:[%s2049_s9 + $0x38] sm:$0xff] }
 0x161   :  { %v837_v31 = vadd.f32 %v833_v15, %v695_v25  ;;  %990 = vmatmul.f32.vlgmr.msrb.gmra.mxu2 %v902_v26  ;;  %v1065_v15 = vld [vmem:[%s2049_s9 + $0x50] sm:$0xff]  ;;  %v1056_v25 = vld [vmem:[%s2049_s9 + $0x8] sm:$0xff]  ;;  %v1055_v26 = vld [vmem:[%s2049_s9] sm:$0xff] }
 0x162   :  { %v734_v39 = vpop.f32.mrf.mxu2 }
 0x163   :  { %v861_v38 = vadd.f32 %v857_v9, %v837_v31  ;;  %v735_v43 = vadd.f32 %v734_v39, %v715_v32  ;;  %v1057_v9 = vld [vmem:[%s2049_s9 + $0x10] sm:$0xff] }
 0x165   :  { %v884_v45 = vadd.f32 %v880_v30, %v861_v38  ;;  %v755_v47 = vadd.f32 %v754_v44, %v735_v43 }
 0x167   :  { %v899_v49 = vadd.f32 %v891_v40, %v884_v45  ;;  %v838_v52 = vadd.f32 %v834_v41, %v755_v47  ;;  %v1238_v45 = vld [vmem:[%s2050_s10] ss:$0 sm:$0xff] }
 0x169   :  { %1127 = vmatmul.f32.vlgmr.msra.gmra.mxu2 %v1759_v48  ;;  %v903_v53 = vmax.f32 %v899_v49, 0.0  ;;  %v862_v54 = vadd.f32 %v858_v46, %v838_v52  ;;  %v794_v48 = vpop.f32.mrf.mxu3  ;;  %v1236_v46 = vld [vmem:[%s2050_s10 + $0x1] ss:$0 sm:$0xff]  ;;  %v1193_v52 = vmul.f32 %v1238_v45, %v1863_v12 }
 0x16b   :  { %1010 = vmatmul.f32.vlgmr.msra.gmra.mxu0 %v903_v53  ;;  %v885_v57 = vadd.f32 %v881_v51, %v862_v54  ;;  %v1197_v53 = vmul.f32 %v1236_v46, %v1903_v34 }
 0x16d   :  { %v900_v58 = vadd.f32 %v892_v56, %v885_v57  ;;  %v1239_v56 = vld [vmem:[%s2050_s10 + $0x2] ss:$0 sm:$0xff] }
 0x16f   :  { %v904_v60 = vmax.f32 %v900_v58, 0.0 }
 0x171   :  { %1030 = vmatmul.f32.vlgmr.msrb.gmra.mxu1 %v904_v60 }
 0x173   :  { %1147 = vmatmul.f32.vlgmr.msrb.gmra.mxu0 %v1763_v3 }
 0x174   :  { %v774_v62 = vpop.f32.mrf.mxu1 }
 0x175   :  { %v775_v0 = vadd.f32 %v774_v62, %v573_v61 }
 0x177   :  { %v795_v4 = vadd.f32 %v794_v48, %v775_v0 }
 0x179   :  { %v815_v1 = vadd.f32 %v814_v5, %v795_v4  ;;  %1220 = vmatmul.msk.f32.vlgmr.msra.gmra.mxu1 %vm206_vm0, %v1768_v36  ;;  %v1069_v36 = vld [vmem:[%s2049_s9 + $0x70] sm:$0xff] }
 0x17a   :  { %1172 = vmatpush.msra.mxu3 %v1069_v36 }
 0x17b   :  { %v839_v3 = vadd.f32 %v835_v6, %v815_v1 }
 0x17c   :  { %1173 = vmatpush.msra.mxu3 %v1068_v17 }
 0x17d   :  { %v863_v24 = vadd.f32 %v859_v8, %v839_v3 }
 0x17e   :  { %1174 = vmatpush.msra.mxu3 %v1067_v50 }
 0x17f   :  { %v886_v13 = vadd.f32 %v882_v10, %v863_v24 }
 0x180   :  { %1175 = vmatpush.msra.mxu3 %v1066_v55 }
 0x181   :  { %v901_v28 = vadd.f32 %v893_v11, %v886_v13 }
 0x182   :  { %1176 = vmatpush.msra.mxu3 %v1065_v15 }
 0x183   :  { %v905_v14 = vmax.f32 %v901_v28, 0.0 }
 0x184   :  { %1177 = vmatpush.msra.mxu3 %v1064_v16 }
 0x185   :  { %1050 = vmatmul.f32.vlgmr.msrb.gmra.mxu3 %v905_v14 }
 0x186   :  { %1178 = vmatpush.msra.mxu3 %v1063_v18 }
 0x188   :  { %1179 = vmatpush.msra.mxu3 %v1062_v19 }
 0x18a   :  { %1180 = vmatpush.msra.mxu3 %v1061_v20 }
 0x18c   :  { %1181 = vmatpush.msra.mxu3 %v1060_v21 }
 0x18e   :  { %1182 = vmatpush.msra.mxu3 %v1059_v22 }
 0x190   :  { %1183 = vmatpush.msra.mxu3 %v1058_v23 }
 0x192   :  { %1184 = vmatpush.msra.mxu3 %v1057_v9 }
 0x194   :  { %1185 = vmatpush.msra.mxu3 %v1056_v25 }
 0x196   :  { %1186 = vmatpush.msra.mxu3 %v1055_v26 }
 0x1e4   :  { %v991_v29 = vpop.f32.mrf.mxu2 }
 0x1e5   :  { %v992_v31 = vadd.f32 %v1237_v27, %v991_v29 }
 0x1e8   :  { %v1011_v30 = vpop.f32.mrf.mxu0 }
 0x1e9   :  { %v1012_v33 = vadd.f32 %v1011_v30, %v992_v31 }
 0x1ec   :  { %v1128_v42 = vpop.f32.mrf.mxu2 }
 0x1ee   :  { %v1031_v32 = vpop.f32.mrf.mxu1 }
 0x1ef   :  { %v1032_v37 = vadd.f32 %v1031_v32, %v1012_v33 }
 0x1f0   :  { %v1148_v41 = vpop.f32.mrf.mxu0 }
 0x1f1   :  { %v1149_v44 = vadd.f32 %v1148_v41, %v1128_v42 }
 0x1f6   :  { %v1168_v43 = vpop.f32.mrf.mxu1 }
 0x1f7   :  { %v1169_v47 = vadd.f32 %v1168_v43, %v1149_v44 }
 0x208   :  { %v1051_v38 = vpop.f32.mrf.mxu3 }
 0x209   :  { %v1052_v39 = vadd.f32 %v1051_v38, %v1032_v37 }
 0x20b   :  { %v1054_v40 = vmax.f32 %v1052_v39, 0.0 }
 0x20d   :  { %1187 = vmatmul.f32.vlgmr.msra.gmra.mxu3 %v1054_v40 }
 0x290   :  { %v1188_v49 = vpop.f32.mrf.mxu3 }
 0x291   :  { %v1189_v51 = vadd.f32 %v1188_v49, %v1169_v47 }
 0x293   :  { %v1194_v54 = vadd.f32 %v1193_v52, %v1189_v51 }
 0x295   :  { %v1198_v57 = vadd.f32 %v1197_v53, %v1194_v54 }
 0x297   :  { %v1201_v58 = vadd.f32 %v1239_v56, %v1198_v57 }
 0x299   :  { %1202 = vst [vmem:[%s2051_s11] sm:$0x3] %v1201_v58 }
 0x29a   :  { %1207 = vsyncpa [#allocation3], 1 }
 0x29b   :  { %1208 = vsyncpa [#allocation5], 1 }

</bundles_post_ra>
